<compile_context>
chip_gen: v6e
topology: v6e:2x2x1
jax: 0.10.0
libtpu: 0.0.40
codegen_flags: <defaults>
</compile_context>

<pallas_src>
from functools import partial

import jax
import jax.numpy as jnp
from jax.experimental import pallas as pl
from jax.experimental.pallas import tpu as pltpu

_BN_EPS = 1e-5
_MB = 1 << 20


# ----------------------------- kernels ------------------------------------- #

def _conv1_kernel(x_ref, w_ref, shift_ref, o_ref):
    # Conv1d(1, 128, k=3, stride=3, pad=0) + BN + ReLU.
    #   x_ref : (1, G, 27) f32   -- row q holds the 27 raw samples of conv1 rows 9q..9q+8.
    #   w_ref : (27, 1152) f32   -- block-diagonal stack of the (3,128) weight (BN scale
    #                               folded in), one block per output-row slot.
    #   o_ref : (1, G, 1152) bf16 -- == conv2's grouped input (lane group j = row 9q+j).
    # Split into 3 matmuls (K=9, N=384) to bound the f32 intermediate working set.
    n_in = x_ref.shape[-1] // 3            # 9
    n_out = o_ref.shape[-1] // 3           # 384
    for t in range(3):
        xs = x_ref[0, :, t * n_in:(t + 1) * n_in]                       # (G, 9)
        ws = w_ref[t * n_in:(t + 1) * n_in, t * n_out:(t + 1) * n_out]  # (9, 384)
        y = jnp.dot(xs, ws, preferred_element_type=jnp.float32)
        y = jnp.maximum(y + shift_ref[:, t * n_out:(t + 1) * n_out], 0.0)
        o_ref[0, :, t * n_out:(t + 1) * n_out] = y.astype(o_ref.dtype)


def _grouped_conv_pool_kernel(xg_ref, w_ref, shift_ref, o_ref, prev_ref, next_ref,
                              *, cin, cout):
    # Conv1d(cin, cout, k=3, s=1, p=1) + BN + ReLU + MaxPool1d(3, 3), fused.
    #   xg_ref : (1, G, 9*cin)  -- grouped row q, lane group j holds x[9q + j].
    #   w_ref  : (3*cin, cout)  -- taps stacked along K: [W(x[l-1]); W(x[l]); W(x[l+1])],
    #                              BN scale folded in.
    #   o_ref  : (1, G, 3*cout) -- lane group u of row q holds pooled row 3q + u.
    #   prev/next_ref: (G, cin) f32 scratch -- the +-1-row neighbour columns needed by the
    #                              first/last conv row of each group (conv padding = 0).
    G = xg_ref.shape[1]
    w = w_ref[...]
    shift = shift_ref[...]
    zrow = jnp.zeros((1, cin), jnp.float32)

    # prev_ref[q] = x[9q - 1] (zero for q == 0 -> left conv pad)
    col_last = xg_ref[0, :, 8 * cin:9 * cin].astype(jnp.float32)   # aligned load
    prev_ref[0:1, :] = zrow
    prev_ref[1:G, :] = col_last[:G - 1]
    # next_ref[q] = x[9q + 9] (zero for q == G-1 -> right conv pad)
    col_first = xg_ref[0, :, 0:cin].astype(jnp.float32)
    next_ref[0:G - 1, :] = col_first[1:]
    next_ref[G - 1:G, :] = zrow

    def conv_row(s):
        # conv output row 9q + s for every grouped row q at once (f32, no BN shift yet).
        if s == 0:
            return (jnp.dot(prev_ref[...].astype(jnp.bfloat16), w[:cin],
                            preferred_element_type=jnp.float32)
                    + jnp.dot(xg_ref[0, :, :2 * cin], w[cin:],
                              preferred_element_type=jnp.float32))
        if s == 8:
            return (jnp.dot(xg_ref[0, :, 7 * cin:], w[:2 * cin],
                            preferred_element_type=jnp.float32)
                    + jnp.dot(next_ref[...].astype(jnp.bfloat16), w[2 * cin:],
                              preferred_element_type=jnp.float32))
        return jnp.dot(xg_ref[0, :, (s - 1) * cin:(s + 2) * cin], w,
                       preferred_element_type=jnp.float32)

    for u in range(3):
        acc = conv_row(3 * u)
        acc = jnp.maximum(acc, conv_row(3 * u + 1))
        acc = jnp.maximum(acc, conv_row(3 * u + 2))
        # BN shift + ReLU after the max (both monotonic) -> once per pooled row.
        acc = jnp.maximum(acc + shift, 0.0)
        o_ref[0, :, u * cout:(u + 1) * cout] = acc.astype(o_ref.dtype)


def _tail_kernel(x_ref, w7_ref, s7_ref, w8_ref, s8_ref, w9_ref, s9_ref,
                 w10_ref, s10_ref, w11_ref, s11_ref, fcw_ref, fcb_ref,
                 o_ref, buf_ref):
    # conv7..conv10 (k=3,p=1 + BN + ReLU + MaxPool/3), conv11 (length-1 -> centre tap),
    # Dropout (identity), flatten, Linear(512, 1), Sigmoid -- all fused.
    #   buf_ref: (83, 256) f32 scratch -- current activation with one zero conv-padding
    #            row on each side (row 0 and row L+1); overwritten layer by layer.
    B = x_ref.shape[0]
    C = x_ref.shape[-1]                    # 256
    zrow = jnp.zeros((1, C), jnp.float32)

    def conv_rows(L, w):
        # conv rows 0..L-1: input row l-1 / l / l+1 live in buf rows l..l+2.
        return (jnp.dot(buf_ref[0:L, :], w[:C], preferred_element_type=jnp.float32)
                + jnp.dot(buf_ref[1:L + 1, :], w[C:2 * C],
                          preferred_element_type=jnp.float32)
                + jnp.dot(buf_ref[2:L + 2, :], w[2 * C:],
                          preferred_element_type=jnp.float32))

    def pool_row(y, p, shift):
        m = jnp.maximum(jnp.maximum(y[3 * p:3 * p + 1], y[3 * p + 1:3 * p + 2]),
                        y[3 * p + 2:3 * p + 3])
        return jnp.maximum(m + shift, 0.0)

    for b in range(B):
        buf_ref[0:1, :] = zrow
        buf_ref[1:82, :] = x_ref[b].astype(jnp.float32)
        buf_ref[82:83, :] = zrow

        L = 81
        for w_r, s_r in ((w7_ref, s7_ref), (w8_ref, s8_ref), (w9_ref, s9_ref)):
            y = conv_rows(L, w_r[...].astype(jnp.float32))
            shift = s_r[...]
            lp = L // 3
            for p in range(lp):
                buf_ref[1 + p:2 + p, :] = pool_row(y, p, shift)
            buf_ref[1 + lp:2 + lp, :] = zrow        # fresh right conv-pad row
            L = lp

        # conv10: (3, 256) -> (1, 512)
        y10 = conv_rows(3, w10_ref[...].astype(jnp.float32))
        h = pool_row(y10, 0, s10_ref[...])          # (1, 512) f32

        # conv11: length-1 sequence with p=1 -> centre tap only; Dropout = identity.
        h = jnp.dot(h.astype(jnp.bfloat16), w11_ref[...],
                    preferred_element_type=jnp.float32)
        h = jnp.maximum(h + s11_ref[...], 0.0)      # (1, 512) f32

        # flatten + Linear(512, 1) + Sigmoid.
        z = jnp.dot(h, fcw_ref[...], preferred_element_type=jnp.float32) + fcb_ref[...]
        o_ref[b:b + 1, :] = 1.0 / (1.0 + jnp.exp(-z))


# ------------------------------ layers ------------------------------------- #

def conv1_layer(x, w_bd, shift_t):
    # x: (B, 59049) f32 raw waveform -> (B, 2187, 1152) bf16 (== conv2's grouped input).
    B, L = x.shape
    assert L % 27 == 0
    G = L // 27
    n_lanes = w_bd.shape[1]
    xr = x.reshape(B, G, 27)
    est = 3 * (G * 128 * 4 + G * n_lanes * 2) + 24 * _MB
    return pl.pallas_call(
        _conv1_kernel,
        out_shape=jax.ShapeDtypeStruct((B, G, n_lanes), jnp.bfloat16),
        grid=(B,),
        in_specs=[pl.BlockSpec((1, G, 27), lambda b: (b, 0, 0)),
                  pl.BlockSpec((27, n_lanes), lambda b: (0, 0)),
                  pl.BlockSpec((1, n_lanes), lambda b: (0, 0))],
        out_specs=pl.BlockSpec((1, G, n_lanes), lambda b: (b, 0, 0)),
        compiler_params=pltpu.CompilerParams(
            dimension_semantics=("parallel",),
            vmem_limit_bytes=int(est)),
    )(xr, w_bd, shift_t)


def conv_pool_layer(xg, w, shift):
    # xg: (B, G, 9*cin) bf16 grouped activation -> (B, G, 3*cout) bf16 (pooled, grouped x3).
    B, G, lanes = xg.shape
    assert lanes % 9 == 0
    cin = lanes // 9
    cout = w.shape[1]
    est = (3 * (G * 9 * cin + G * 3 * cout) * 2     # in/out blocks (double buffer + slack)
           + 4 * (3 * cin * cout) * 2               # weights
           + 4 * G * cin * 4                        # prev/next scratch (+ copies)
           + 6 * G * cout * 4                       # f32 conv-row / accumulator slabs
           + 8 * _MB)
    return pl.pallas_call(
        partial(_grouped_conv_pool_kernel, cin=cin, cout=cout),
        out_shape=jax.ShapeDtypeStruct((B, G, 3 * cout), jnp.bfloat16),
        grid=(B,),
        in_specs=[pl.BlockSpec((1, G, 9 * cin), lambda b: (b, 0, 0)),
                  pl.BlockSpec((3 * cin, cout), lambda b: (0, 0)),
                  pl.BlockSpec((1, cout), lambda b: (0, 0))],
        out_specs=pl.BlockSpec((1, G, 3 * cout), lambda b: (b, 0, 0)),
        scratch_shapes=[pltpu.VMEM((G, cin), jnp.float32),
                        pltpu.VMEM((G, cin), jnp.float32)],
        compiler_params=pltpu.CompilerParams(
            dimension_semantics=("parallel",),
            vmem_limit_bytes=int(est)),
    )(xg, w, shift)


def tail_layer(h, p7, p8, p9, p10, p11, fc_w, fc_b):
    # h: (B, 81, 256) bf16 (conv6 output) -> (B, 1) f32 sigmoid scores.
    B = h.shape[0]

    def full(arr):
        shape = arr.shape
        return pl.BlockSpec(shape, lambda i, _s=shape: (0,) * len(_s))

    args = (h, p7[0], p7[1], p8[0], p8[1], p9[0], p9[1],
            p10[0], p10[1], p11[0], p11[1], fc_w, fc_b)
    return pl.pallas_call(
        _tail_kernel,
        out_shape=jax.ShapeDtypeStruct((B, 1), jnp.float32),
        grid=(1,),
        in_specs=[full(a) for a in args],
        out_specs=pl.BlockSpec((B, 1), lambda i: (0, 0)),
        scratch_shapes=[pltpu.VMEM((83, 256), jnp.float32)],
        compiler_params=pltpu.CompilerParams(
            dimension_semantics=("arbitrary",),
            vmem_limit_bytes=24 * _MB),
    )(*args)


# --------------------------- parameters ------------------------------------ #

def _bn_scale_shift(p):
    scale = p["gamma"] / jnp.sqrt(p["var"] + _BN_EPS)
    shift = (p["bias"] - p["mean"]) * scale + p["beta"]
    return scale, shift


def init_raw_params(seed=0):
    # Synthetic conv/BN/fc parameters.  Conv weights are (K=3, Cin, Cout); fc is (1, 512).
    key = jax.random.PRNGKey(seed)
    chans = [(1, 128), (128, 128), (128, 128), (128, 256), (256, 256), (256, 256),
             (256, 256), (256, 256), (256, 256), (256, 512), (512, 512)]
    raw = {}
    for idx, (cin, cout) in enumerate(chans, start=1):
        key, kw, kb, kg, kbeta, km, kv = jax.random.split(key, 7)
        std = (1.0 / (3 * cin)) ** 0.5
        raw[f"conv{idx}"] = dict(
            w=std * jax.random.normal(kw, (3, cin, cout), jnp.float32),
            bias=0.01 * jax.random.normal(kb, (cout,), jnp.float32),
            gamma=1.0 + 0.1 * jax.random.normal(kg, (cout,), jnp.float32),
            beta=0.05 * jax.random.normal(kbeta, (cout,), jnp.float32),
            mean=0.01 * jax.random.normal(km, (cout,), jnp.float32),
            var=1.0 + 0.1 * jnp.abs(jax.random.normal(kv, (cout,), jnp.float32)),
        )
    key, kfw, kfb = jax.random.split(key, 3)
    raw["fc_w"] = (1.0 / 512.0 ** 0.5) * jax.random.normal(kfw, (1, 512), jnp.float32)
    raw["fc_b"] = 0.01 * jax.random.normal(kfb, (1,), jnp.float32)
    return raw


def pack_params(raw):
    packed = {}
    # conv1: block-diagonal (27, 9*128) weight -> one matmul emits 9 conv1 rows in the
    # lanes (== conv2's grouped layout); BN scale folded into the weight.
    p = raw["conv1"]
    scale, shift = _bn_scale_shift(p)
    w1 = p["w"][:, 0, :] * scale[None, :]                                # (3, 128)
    w_bd = jnp.zeros((27, 9 * 128), jnp.float32)
    for j in range(9):
        w_bd = w_bd.at[3 * j:3 * j + 3, 128 * j:128 * (j + 1)].set(w1)
    packed["conv1"] = (w_bd, jnp.tile(shift[None, :], (1, 9)))
    # conv2..conv10: taps stacked along K, BN scale folded in, bf16.
    for idx in range(2, 11):
        p = raw[f"conv{idx}"]
        scale, shift = _bn_scale_shift(p)
        cin, cout = p["w"].shape[1], p["w"].shape[2]
        w = (p["w"] * scale[None, None, :]).reshape(3 * cin, cout).astype(jnp.bfloat16)
        packed[f"conv{idx}"] = (w, shift[None, :])
    # conv11: length-1 sequence -> only the centre tap contributes.
    p = raw["conv11"]
    scale, shift = _bn_scale_shift(p)
    packed["conv11"] = ((p["w"][1] * scale[None, :]).astype(jnp.bfloat16), shift[None, :])
    packed["fc_w"] = raw["fc_w"].T                                       # (512, 1)
    packed["fc_b"] = raw["fc_b"][None, :]                                # (1, 1)
    return packed


# ----------------------------- forward ------------------------------------- #

@jax.jit
def samplecnn_forward(params, x):
    # x: (B, 59049) raw waveform (== x.view(B, 1, -1) in NCL); returns (B, 1).
    B = x.shape[0]
    x = x.reshape(B, -1).astype(jnp.float32)
    h = conv1_layer(x, *params["conv1"])              # (B, 2187, 1152) bf16
    for i in range(2, 7):                             # conv2..conv6 (+ MaxPool/3 each)
        h = conv_pool_layer(h, *params[f"conv{i}"])   # (B, G, 3*cout)
        bh, g, lanes = h.shape
        if i < 6:
            h = h.reshape(bh, g // 3, 3 * lanes)      # free regroup for the next layer
    h = h.reshape(B, 81, 256)                         # conv6 output, plain rows
    # conv6 / conv11 Dropout(0.5): identity at inference.
    return tail_layer(h, params["conv7"], params["conv8"], params["conv9"],
                      params["conv10"], params["conv11"],
                      params["fc_w"], params["fc_b"])


# --------------------------- pure-JAX reference ----------------------------- #

def _ref_bn(y, p):
    return (y - p["mean"]) / jnp.sqrt(p["var"] + _BN_EPS) * p["gamma"] + p["beta"]


def _ref_conv_pool(x, p):
    # f32 reference: Conv1d(k=3, s=1, p=1) + BN + ReLU + MaxPool1d(3, 3).
    w = p["w"]
    xp = jnp.pad(x, ((0, 0), (1, 1), (0, 0)))
    y = xp[:, :-2] @ w[0] + xp[:, 1:-1] @ w[1] + xp[:, 2:] @ w[2] + p["bias"]
    y = jnp.maximum(_ref_bn(y, p), 0.0)
    B, L, C = y.shape
    return jnp.max(y.reshape(B, L // 3, 3, C), axis=2)


def ref_forward(raw, x):
    B = x.shape[0]
    x = x.reshape(B, -1).astype(jnp.float32)
    p = raw["conv1"]
    h = x.reshape(B, -1, 3) @ p["w"][:, 0, :] + p["bias"]
    h = jnp.maximum(_ref_bn(h, p), 0.0)
    for i in range(2, 11):
        h = _ref_conv_pool(h, raw[f"conv{i}"])
    p = raw["conv11"]
    h = h[:, 0, :] @ p["w"][1] + p["bias"]            # centre tap on a length-1 sequence
    h = jnp.maximum(_ref_bn(h, p), 0.0)
    z = h @ raw["fc_w"].T + raw["fc_b"]
    return jax.nn.sigmoid(z)


# ------------------------------- main --------------------------------------- #

if __name__ == "__main__":
    # Single fused conv+BN+ReLU+maxpool layer vs the f32 reference.
    kx, kw = jax.random.split(jax.random.PRNGKey(1))
    cin, cout, L = 128, 128, 243
    lay = dict(
        w=((2.0 / (3 * cin)) ** 0.5) * jax.random.normal(kw, (3, cin, cout), jnp.float32),
        bias=jnp.zeros((cout,), jnp.float32),
        gamma=jnp.full((cout,), 0.9, jnp.float32),
        beta=jnp.full((cout,), 0.05, jnp.float32),
        mean=jnp.zeros((cout,), jnp.float32),
        var=jnp.ones((cout,), jnp.float32),
    )
    xs = jax.random.normal(kx, (2, L, cin), jnp.float32)
    scale, shift = _bn_scale_shift(lay)
    wk = (lay["w"] * scale[None, None, :]).reshape(3 * cin, cout).astype(jnp.bfloat16)
    got = conv_pool_layer(xs.astype(jnp.bfloat16).reshape(2, L // 9, 9 * cin),
                          wk, shift[None, :])
    got = got.reshape(2, L // 3, cout).astype(jnp.float32)
    want = _ref_conv_pool(xs, lay)
    err1 = float(jnp.max(jnp.abs(got - want)))
    assert err1 < 0.2, f"conv_pool mismatch: max abs err {err1}"

    # Full forward pass.  59049 = 3**10 samples: the smallest length for which the
    # flatten feeds Linear(512, 1).
    raw = init_raw_params(0)
    params = pack_params(raw)
    x = jax.random.normal(jax.random.PRNGKey(0), (2, 59049), jnp.float32)
    out = jax.block_until_ready(samplecnn_forward(params, x))
    assert out.shape == (2, 1), out.shape
    assert bool(jnp.all(jnp.isfinite(out)))
    assert bool(jnp.all((out >= 0.0) & (out <= 1.0)))

    # End-to-end check against the pure-JAX f32 reference.
    want_full = jax.jit(ref_forward)(raw, x)
    err2 = float(jnp.max(jnp.abs(out - want_full)))
    assert err2 < 0.12, f"end-to-end mismatch vs f32 reference: max abs err {err2}"
    print("KERNEL_OK")
</pallas_src>

<mosaic_0001>
module attributes {stable_mosaic.version = 11 : i64} {
  func.func @_grouped_conv_pool_kernel(%arg0: i32, %arg1: memref<1x27x1152xbf16, #tpu.memory_space<vmem>>, %arg2: memref<384x128xbf16, #tpu.memory_space<vmem>>, %arg3: memref<1x128xf32, #tpu.memory_space<vmem>>, %arg4: memref<1x27x384xbf16, #tpu.memory_space<vmem>>, %arg5: memref<27x128xf32, #tpu.memory_space<vmem>>, %arg6: memref<27x128xf32, #tpu.memory_space<vmem>>) attributes {dimension_semantics = [#tpu.dimension_semantics<parallel>], iteration_bounds = array<i64: 2>, scalar_prefetch = 0 : i64, scratch_operands = 2 : i64, tpu.core_type = #tpu.core_type<tc>, window_params = [{transform_indices = @transform_0, window_bounds = array<i64: 1, 27, 1152>}, {pipeline_mode = #tpu.pipeline_mode<synchronous>, transform_indices = @transform_1, window_bounds = array<i64: 384, 128>}, {pipeline_mode = #tpu.pipeline_mode<synchronous>, transform_indices = @transform_2, window_bounds = array<i64: 1, 128>}, {transform_indices = @transform_3, window_bounds = array<i64: 1, 27, 384>}]} {
    %c0 = arith.constant 0 : index
    %c0_0 = arith.constant 0 : index
    %0 = vector.load %arg2[%c0, %c0_0] : memref<384x128xbf16, #tpu.memory_space<vmem>>, vector<384x128xbf16>
    %c0_1 = arith.constant 0 : index
    %c0_2 = arith.constant 0 : index
    %1 = vector.load %arg3[%c0_1, %c0_2] : memref<1x128xf32, #tpu.memory_space<vmem>>, vector<1x128xf32>
    %cst = arith.constant 0.000000e+00 : f32
    %2 = vector.broadcast %cst : f32 to vector<1x128xf32>
    %c0_3 = arith.constant 0 : index
    %c0_4 = arith.constant 0 : index
    %c1024 = arith.constant 1024 : index
    %3 = vector.load %arg1[%c0_3, %c0_4, %c1024] : memref<1x27x1152xbf16, #tpu.memory_space<vmem>>, vector<1x27x128xbf16>
    %4 = vector.shape_cast %3 : vector<1x27x128xbf16> to vector<27x128xbf16>
    %5 = arith.extf %4 : vector<27x128xbf16> to vector<27x128xf32>
    %c0_5 = arith.constant 0 : index
    %c0_6 = arith.constant 0 : index
    %6 = vector.load %arg5[%c0_5, %c0_6] : memref<27x128xf32, #tpu.memory_space<vmem>>, vector<1x128xf32>
    tpu.vector_store %arg5[%c0_5, %c0_6], %2 {strides = array<i32>} : memref<27x128xf32, #tpu.memory_space<vmem>>, vector<1x128xf32>,
    %7 = vector.extract_strided_slice %5 {offsets = [0, 0], sizes = [26, 128], strides = [1, 1]} : vector<27x128xf32> to vector<26x128xf32>
    %c1 = arith.constant 1 : index
    %c0_7 = arith.constant 0 : index
    %8 = vector.load %arg5[%c1, %c0_7] : memref<27x128xf32, #tpu.memory_space<vmem>>, vector<26x128xf32>
    tpu.vector_store %arg5[%c1, %c0_7], %7 {strides = array<i32>} : memref<27x128xf32, #tpu.memory_space<vmem>>, vector<26x128xf32>,
    %c0_8 = arith.constant 0 : index
    %c0_9 = arith.constant 0 : index
    %c0_10 = arith.constant 0 : index
    %9 = vector.load %arg1[%c0_8, %c0_9, %c0_10] : memref<1x27x1152xbf16, #tpu.memory_space<vmem>>, vector<1x27x128xbf16>
    %10 = vector.shape_cast %9 : vector<1x27x128xbf16> to vector<27x128xbf16>
    %11 = arith.extf %10 : vector<27x128xbf16> to vector<27x128xf32>
    %12 = vector.extract_strided_slice %11 {offsets = [1, 0], sizes = [26, 128], strides = [1, 1]} : vector<27x128xf32> to vector<26x128xf32>
    %c0_11 = arith.constant 0 : index
    %c0_12 = arith.constant 0 : index
    %13 = vector.load %arg6[%c0_11, %c0_12] : memref<27x128xf32, #tpu.memory_space<vmem>>, vector<26x128xf32>
    tpu.vector_store %arg6[%c0_11, %c0_12], %12 {strides = array<i32>} : memref<27x128xf32, #tpu.memory_space<vmem>>, vector<26x128xf32>,
    %c26 = arith.constant 26 : index
    %c0_13 = arith.constant 0 : index
    %14 = vector.load %arg6[%c26, %c0_13] : memref<27x128xf32, #tpu.memory_space<vmem>>, vector<1x128xf32>
    tpu.vector_store %arg6[%c26, %c0_13], %2 {strides = array<i32>} : memref<27x128xf32, #tpu.memory_space<vmem>>, vector<1x128xf32>,
    %c0_14 = arith.constant 0 : index
    %c0_15 = arith.constant 0 : index
    %15 = vector.load %arg5[%c0_14, %c0_15] : memref<27x128xf32, #tpu.memory_space<vmem>>, vector<27x128xf32>
    %16 = arith.truncf %15 : vector<27x128xf32> to vector<27x128xbf16>
    %17 = vector.extract_strided_slice %0 {offsets = [0, 0], sizes = [128, 128], strides = [1, 1]} : vector<384x128xbf16> to vector<128x128xbf16>
    %cst_16 = arith.constant dense<0.000000e+00> : vector<27x128xf32>
    %18 = tpu.matmul %16, %17, %cst_16 {dimension_numbers = #tpu.dot_dimension_numbers<[1], [0], [0], [1], [0, 0, 1, 1], [], []>} : vector<27x128xbf16>, vector<128x128xbf16>, vector<27x128xf32> -> vector<27x128xf32>
    %c0_17 = arith.constant 0 : index
    %c0_18 = arith.constant 0 : index
    %c0_19 = arith.constant 0 : index
    %19 = vector.load %arg1[%c0_17, %c0_18, %c0_19] : memref<1x27x1152xbf16, #tpu.memory_space<vmem>>, vector<1x27x256xbf16>
    %20 = vector.shape_cast %19 : vector<1x27x256xbf16> to vector<27x256xbf16>
    %21 = vector.extract_strided_slice %0 {offsets = [128, 0], sizes = [256, 128], strides = [1, 1]} : vector<384x128xbf16> to vector<256x128xbf16>
    %cst_20 = arith.constant dense<0.000000e+00> : vector<27x128xf32>
    %22 = tpu.matmul %20, %21, %cst_20 {dimension_numbers = #tpu.dot_dimension_numbers<[1], [0], [0], [1], [0, 0, 1, 1], [], []>} : vector<27x256xbf16>, vector<256x128xbf16>, vector<27x128xf32> -> vector<27x128xf32>
    %23 = arith.addf %18, %22 : vector<27x128xf32>
    %c0_21 = arith.constant 0 : index
    %c0_22 = arith.constant 0 : index
    %c0_23 = arith.constant 0 : index
    %24 = vector.load %arg1[%c0_21, %c0_22, %c0_23] : memref<1x27x1152xbf16, #tpu.memory_space<vmem>>, vector<1x27x384xbf16>
    %25 = vector.shape_cast %24 : vector<1x27x384xbf16> to vector<27x384xbf16>
    %cst_24 = arith.constant dense<0.000000e+00> : vector<27x128xf32>
    %26 = tpu.matmul %25, %0, %cst_24 {dimension_numbers = #tpu.dot_dimension_numbers<[1], [0], [0], [1], [0, 0, 1, 1], [], []>} : vector<27x384xbf16>, vector<384x128xbf16>, vector<27x128xf32> -> vector<27x128xf32>
    %27 = arith.maximumf %23, %26 : vector<27x128xf32>
    %c0_25 = arith.constant 0 : index
    %c0_26 = arith.constant 0 : index
    %c128 = arith.constant 128 : index
    %28 = vector.load %arg1[%c0_25, %c0_26, %c128] : memref<1x27x1152xbf16, #tpu.memory_space<vmem>>, vector<1x27x384xbf16>
    %29 = vector.shape_cast %28 : vector<1x27x384xbf16> to vector<27x384xbf16>
    %cst_27 = arith.constant dense<0.000000e+00> : vector<27x128xf32>
    %30 = tpu.matmul %29, %0, %cst_27 {dimension_numbers = #tpu.dot_dimension_numbers<[1], [0], [0], [1], [0, 0, 1, 1], [], []>} : vector<27x384xbf16>, vector<384x128xbf16>, vector<27x128xf32> -> vector<27x128xf32>
    %31 = arith.maximumf %27, %30 : vector<27x128xf32>
    %32 = vector.broadcast %1 : vector<1x128xf32> to vector<27x128xf32>
    %33 = arith.addf %31, %32 : vector<27x128xf32>
    %cst_28 = arith.constant 0.000000e+00 : f32
    %34 = vector.broadcast %cst_28 : f32 to vector<27x128xf32>
    %35 = arith.maximumf %33, %34 : vector<27x128xf32>
    %36 = arith.truncf %35 : vector<27x128xf32> to vector<27x128xbf16>
    %c0_29 = arith.constant 0 : index
    %c0_30 = arith.constant 0 : index
    %c0_31 = arith.constant 0 : index
    %37 = vector.load %arg4[%c0_29, %c0_30, %c0_31] : memref<1x27x384xbf16, #tpu.memory_space<vmem>>, vector<1x27x128xbf16>
    %38 = vector.shape_cast %37 : vector<1x27x128xbf16> to vector<27x128xbf16>
    %39 = vector.shape_cast %36 : vector<27x128xbf16> to vector<1x27x128xbf16>
    tpu.vector_store %arg4[%c0_29, %c0_30, %c0_31], %39 {strides = array<i32>} : memref<1x27x384xbf16, #tpu.memory_space<vmem>>, vector<1x27x128xbf16>,
    %c0_32 = arith.constant 0 : index
    %c0_33 = arith.constant 0 : index
    %c256 = arith.constant 256 : index
    %40 = vector.load %arg1[%c0_32, %c0_33, %c256] : memref<1x27x1152xbf16, #tpu.memory_space<vmem>>, vector<1x27x384xbf16>
    %41 = vector.shape_cast %40 : vector<1x27x384xbf16> to vector<27x384xbf16>
    %cst_34 = arith.constant dense<0.000000e+00> : vector<27x128xf32>
    %42 = tpu.matmul %41, %0, %cst_34 {dimension_numbers = #tpu.dot_dimension_numbers<[1], [0], [0], [1], [0, 0, 1, 1], [], []>} : vector<27x384xbf16>, vector<384x128xbf16>, vector<27x128xf32> -> vector<27x128xf32>
    %c0_35 = arith.constant 0 : index
    %c0_36 = arith.constant 0 : index
    %c384 = arith.constant 384 : index
    %43 = vector.load %arg1[%c0_35, %c0_36, %c384] : memref<1x27x1152xbf16, #tpu.memory_space<vmem>>, vector<1x27x384xbf16>
    %44 = vector.shape_cast %43 : vector<1x27x384xbf16> to vector<27x384xbf16>
    %cst_37 = arith.constant dense<0.000000e+00> : vector<27x128xf32>
    %45 = tpu.matmul %44, %0, %cst_37 {dimension_numbers = #tpu.dot_dimension_numbers<[1], [0], [0], [1], [0, 0, 1, 1], [], []>} : vector<27x384xbf16>, vector<384x128xbf16>, vector<27x128xf32> -> vector<27x128xf32>
    %46 = arith.maximumf %42, %45 : vector<27x128xf32>
    %c0_38 = arith.constant 0 : index
    %c0_39 = arith.constant 0 : index
    %c512 = arith.constant 512 : index
    %47 = vector.load %arg1[%c0_38, %c0_39, %c512] : memref<1x27x1152xbf16, #tpu.memory_space<vmem>>, vector<1x27x384xbf16>
    %48 = vector.shape_cast %47 : vector<1x27x384xbf16> to vector<27x384xbf16>
    %cst_40 = arith.constant dense<0.000000e+00> : vector<27x128xf32>
    %49 = tpu.matmul %48, %0, %cst_40 {dimension_numbers = #tpu.dot_dimension_numbers<[1], [0], [0], [1], [0, 0, 1, 1], [], []>} : vector<27x384xbf16>, vector<384x128xbf16>, vector<27x128xf32> -> vector<27x128xf32>
    %50 = arith.maximumf %46, %49 : vector<27x128xf32>
    %51 = vector.broadcast %1 : vector<1x128xf32> to vector<27x128xf32>
    %52 = arith.addf %50, %51 : vector<27x128xf32>
    %cst_41 = arith.constant 0.000000e+00 : f32
    %53 = vector.broadcast %cst_41 : f32 to vector<27x128xf32>
    %54 = arith.maximumf %52, %53 : vector<27x128xf32>
    %55 = arith.truncf %54 : vector<27x128xf32> to vector<27x128xbf16>
    %c0_42 = arith.constant 0 : index
    %c0_43 = arith.constant 0 : index
    %c128_44 = arith.constant 128 : index
    %56 = vector.load %arg4[%c0_42, %c0_43, %c128_44] : memref<1x27x384xbf16, #tpu.memory_space<vmem>>, vector<1x27x128xbf16>
    %57 = vector.shape_cast %56 : vector<1x27x128xbf16> to vector<27x128xbf16>
    %58 = vector.shape_cast %55 : vector<27x128xbf16> to vector<1x27x128xbf16>
    tpu.vector_store %arg4[%c0_42, %c0_43, %c128_44], %58 {strides = array<i32>} : memref<1x27x384xbf16, #tpu.memory_space<vmem>>, vector<1x27x128xbf16>,
    %c0_45 = arith.constant 0 : index
    %c0_46 = arith.constant 0 : index
    %c640 = arith.constant 640 : index
    %59 = vector.load %arg1[%c0_45, %c0_46, %c640] : memref<1x27x1152xbf16, #tpu.memory_space<vmem>>, vector<1x27x384xbf16>
    %60 = vector.shape_cast %59 : vector<1x27x384xbf16> to vector<27x384xbf16>
    %cst_47 = arith.constant dense<0.000000e+00> : vector<27x128xf32>
    %61 = tpu.matmul %60, %0, %cst_47 {dimension_numbers = #tpu.dot_dimension_numbers<[1], [0], [0], [1], [0, 0, 1, 1], [], []>} : vector<27x384xbf16>, vector<384x128xbf16>, vector<27x128xf32> -> vector<27x128xf32>
    %c0_48 = arith.constant 0 : index
    %c0_49 = arith.constant 0 : index
    %c768 = arith.constant 768 : index
    %62 = vector.load %arg1[%c0_48, %c0_49, %c768] : memref<1x27x1152xbf16, #tpu.memory_space<vmem>>, vector<1x27x384xbf16>
    %63 = vector.shape_cast %62 : vector<1x27x384xbf16> to vector<27x384xbf16>
    %cst_50 = arith.constant dense<0.000000e+00> : vector<27x128xf32>
    %64 = tpu.matmul %63, %0, %cst_50 {dimension_numbers = #tpu.dot_dimension_numbers<[1], [0], [0], [1], [0, 0, 1, 1], [], []>} : vector<27x384xbf16>, vector<384x128xbf16>, vector<27x128xf32> -> vector<27x128xf32>
    %65 = arith.maximumf %61, %64 : vector<27x128xf32>
    %c0_51 = arith.constant 0 : index
    %c0_52 = arith.constant 0 : index
    %c896 = arith.constant 896 : index
    %66 = vector.load %arg1[%c0_51, %c0_52, %c896] : memref<1x27x1152xbf16, #tpu.memory_space<vmem>>, vector<1x27x256xbf16>
    %67 = vector.shape_cast %66 : vector<1x27x256xbf16> to vector<27x256xbf16>
    %68 = vector.extract_strided_slice %0 {offsets = [0, 0], sizes = [256, 128], strides = [1, 1]} : vector<384x128xbf16> to vector<256x128xbf16>
    %cst_53 = arith.constant dense<0.000000e+00> : vector<27x128xf32>
    %69 = tpu.matmul %67, %68, %cst_53 {dimension_numbers = #tpu.dot_dimension_numbers<[1], [0], [0], [1], [0, 0, 1, 1], [], []>} : vector<27x256xbf16>, vector<256x128xbf16>, vector<27x128xf32> -> vector<27x128xf32>
    %c0_54 = arith.constant 0 : index
    %c0_55 = arith.constant 0 : index
    %70 = vector.load %arg6[%c0_54, %c0_55] : memref<27x128xf32, #tpu.memory_space<vmem>>, vector<27x128xf32>
    %71 = arith.truncf %70 : vector<27x128xf32> to vector<27x128xbf16>
    %72 = vector.extract_strided_slice %0 {offsets = [256, 0], sizes = [128, 128], strides = [1, 1]} : vector<384x128xbf16> to vector<128x128xbf16>
    %cst_56 = arith.constant dense<0.000000e+00> : vector<27x128xf32>
    %73 = tpu.matmul %71, %72, %cst_56 {dimension_numbers = #tpu.dot_dimension_numbers<[1], [0], [0], [1], [0, 0, 1, 1], [], []>} : vector<27x128xbf16>, vector<128x128xbf16>, vector<27x128xf32> -> vector<27x128xf32>
    %74 = arith.addf %69, %73 : vector<27x128xf32>
    %75 = arith.maximumf %65, %74 : vector<27x128xf32>
    %76 = vector.broadcast %1 : vector<1x128xf32> to vector<27x128xf32>
    %77 = arith.addf %75, %76 : vector<27x128xf32>
    %cst_57 = arith.constant 0.000000e+00 : f32
    %78 = vector.broadcast %cst_57 : f32 to vector<27x128xf32>
    %79 = arith.maximumf %77, %78 : vector<27x128xf32>
    %80 = arith.truncf %79 : vector<27x128xf32> to vector<27x128xbf16>
    %c0_58 = arith.constant 0 : index
    %c0_59 = arith.constant 0 : index
    %c256_60 = arith.constant 256 : index
    %81 = vector.load %arg4[%c0_58, %c0_59, %c256_60] : memref<1x27x384xbf16, #tpu.memory_space<vmem>>, vector<1x27x128xbf16>
    %82 = vector.shape_cast %81 : vector<1x27x128xbf16> to vector<27x128xbf16>
    %83 = vector.shape_cast %80 : vector<27x128xbf16> to vector<1x27x128xbf16>
    tpu.vector_store %arg4[%c0_58, %c0_59, %c256_60], %83 {strides = array<i32>} : memref<1x27x384xbf16, #tpu.memory_space<vmem>>, vector<1x27x128xbf16>,
    return
  }
  func.func @transform_0(%arg0: i32) -> (i32, i32, i32) {
    %c0_i32 = arith.constant 0 : i32
    %c0_i32_0 = arith.constant 0 : i32
    %c0_i32_1 = arith.constant 0 : i32
    return %arg0, %c0_i32, %c0_i32_0 : i32, i32, i32
  }
  func.func @transform_1(%arg0: i32) -> (i32, i32) {
    %c0_i32 = arith.constant 0 : i32
    %c0_i32_0 = arith.constant 0 : i32
    %c0_i32_1 = arith.constant 0 : i32
    return %c0_i32, %c0_i32_0 : i32, i32
  }
  func.func @transform_2(%arg0: i32) -> (i32, i32) {
    %c0_i32 = arith.constant 0 : i32
    %c0_i32_0 = arith.constant 0 : i32
    %c0_i32_1 = arith.constant 0 : i32
    return %c0_i32, %c0_i32_0 : i32, i32
  }
  func.func @transform_3(%arg0: i32) -> (i32, i32, i32) {
    %c0_i32 = arith.constant 0 : i32
    %c0_i32_0 = arith.constant 0 : i32
    %c0_i32_1 = arith.constant 0 : i32
    return %arg0, %c0_i32, %c0_i32_0 : i32, i32, i32
  }
}

</mosaic_0001>

<bundles_post_ra>
// kernel: tpu_custom_call.1
= control target key start
LH: loop header
LB: loop body
LE: loop exit
PB: predicated region body
PF: predicated region fallthrough
CT: control target
= control target key end

     0   :  { %s2555_s12 = smov 0   ;;  %s3139_s0 = inlined_call_operand.vmem [shape: bf16[2,27,1152], index: 0, kind: input, shape index: {}]   ;;  %s3140_s1 = inlined_call_operand.vmem [shape: bf16[384,128], index: 1, kind: input, shape index: {}]   ;;  %s3141_s2 = inlined_call_operand.vmem [shape: f32[1,128], index: 2, kind: input, shape index: {}]   ;;  %s3142_s3 = inlined_call_operand.vmem [shape: bf16[2,27,384], index: 3, kind: output, shape index: {}]  }
   0x1 LB: > { %s1791_s13 = sadd.s32 4294967295, %s2532_s12   ;;  %p1795_p0 = scmp.ge.s32.totalorder %s2532_s12, 1  ;;  %s2532_s12 = sphi %s2555_s12, %s13_s12  }
   0x2   : > { %p137_p1 = scmp.lt.s32.totalorder %s2532_s12, 3 }
   0x4   : > { %p138_p2 = pnand %p1795_p0, %p137_p1 }
   0x5   : > { %p161_p3 = scmp.lt.s32.totalorder (!%p138_p2), %s1791_s13, 1 }
   0x6   : > { %141 = sbr.rel (%p138_p2) target bundleno = 524 (0x20c), region = 32 }
   0xb   : > { %v2566_v0 = vld [vmem:[%s3140_s1 + $0xb8] sm:$0xff]   ;;  %v2534_v3 = vmov 0.0   ;;  %v2583_v4 = vld [vmem:[%s3140_s1 + $0xb0] sm:$0xff]   ;;  %v2602_v7 = vld [vmem:[%s3140_s1 + $0xa8] sm:$0xff]   ;;  %s3146_s13 = smov (!%p161_p3, %s1791_s13), 1  ;;  %vm836_vm0 = vcmask 1041408  }
   0xc   : > { %v2571_v1 = vld [vmem:[%s3140_s1 + $0x38] sm:$0xff]   ;;  %1899 = vmatprep.subr.bf16.mxu0 %v2566_v0  ;;  %229 = vst [vmem:[#allocation2] sm:$0x1] %v2534_v3  ;;  %246 = vst [vmem:[#allocation3 + $0x1a] sm:$0x1] %v2534_v3  ;;  %v2590_v5 = vld [vmem:[%s3140_s1 + $0x30] sm:$0xff]  }
   0xd   : > { %v2577_v2 = vld [vmem:[%s3140_s1 + $0x78] sm:$0xff]   ;;  %2241 = vmatprep.subr.bf16.mxu1 %v2571_v1  ;;  %v2596_v6 = vld [vmem:[%s3140_s1 + $0x70] sm:$0xff]   ;;  %v2607_v8 = vld [vmem:[%s3140_s1 + $0x28] sm:$0xff]   ;;  %s2421_s23 = smul.u32 144, %s3146_s13  ;;  %vm837_vm1 = vsmask.f32 1280 }
   0xe   : > { %1900 = vmatpush3.bf16.msra.mxu0 %v2577_v2  ;;  %2242 = vmatpush3.bf16.msra.mxu1 %v2571_v1  ;;  %v2614_v9 = vld [vmem:[%s3140_s1 + $0x68] sm:$0xff]   ;;  %v2621_v10 = vld [vmem:[%s3140_s1 + $0xa0] sm:$0xff]   ;;  %v2640_v13 = vld [vmem:[%s3140_s1 + $0x98] sm:$0xff]   ;;  %s2422_s5 = smul.u32 48, %s3146_s13 }
   0xf   : > { %1901 = vmatprep.subr.bf16.mxu0 %v2583_v4  ;;  %2243 = vmatprep.subr.bf16.mxu1 %v2590_v5  ;;  %v2626_v11 = vld [vmem:[%s3140_s1 + $0x20] sm:$0xff]   ;;  %v2647_v14 = vld [vmem:[%s3140_s1 + $0x18] sm:$0xff]   ;;  %v2663_v16 = vld [vmem:[%s3140_s1 + $0x90] sm:$0xff]   ;;  %s2700_s7 = scalar_lea.vmem %s3139_s0, %s2421_s23 }
  0x10   : > { %v2633_v12 = vld [vmem:[%s3140_s1 + $0x60] sm:$0xff]   ;;  %v2656_v15 = vld [vmem:[%s3140_s1 + $0x58] sm:$0xff]   ;;  %v2670_v17 = vld [vmem:[%s3140_s1 + $0x10] sm:$0xff]   ;;  %s3098_s13 = scalar_lea.vmem %s3142_s3, %s2422_s5 }
  0x11   : > { %v2676_v18 = vld [vmem:[%s3140_s1 + $0x50] sm:$0xff]   ;;  %v2683_v19 = vld [vmem:[%s3140_s1 + $0x88] sm:$0xff]   ;;  %v2705_v22 = vld [vmem:[%s3140_s1 + $0x80] sm:$0xff]  }
  0x12   : > { %1902 = vmatpush3.bf16.msra.mxu0 %v2596_v6  ;;  %2244 = vmatpush3.bf16.msra.mxu1 %v2590_v5  ;;  %v2690_v20 = vld [vmem:[%s3140_s1 + $0x8] sm:$0xff]   ;;  %v2712_v23 = vld [vmem:[%s3140_s1] sm:$0xff]   ;;  %v2462_v47 = vld [vmem:[%s2700_s7 + $0x50] ss:$36 sps:$4 sm:$0x3f]  }
  0x13   : > { %1903 = vmatprep.subr.bf16.mxu0 %v2602_v7  ;;  %2245 = vmatprep.subr.bf16.mxu1 %v2607_v8  ;;  %v2695_v21 = vld [vmem:[%s3140_s1 + $0x48] sm:$0xff]   ;;  %v221_v25 = vld [vmem:[%s2700_s7 + $0x20] ss:$36 sps:$4 sm:$0xff]   ;;  %v2470_v52 = vld [vmem:[%s2700_s7 + $0x50] ss:$36 sps:$4 sm:$0x3f]  }
  0x14   : > { %v2458_v24 = vld [vmem:[%s2700_s7 + $0x4] ss:$36 sps:$4 sm:$0xff]   ;;  %v225_v27 = vunpack.c.l.bf16 %v221_v25  ;;  %v226_v28 = vunpack.c.h.bf16 %v221_v25  ;;  %v224_v29 = vld [vmem:[%s2700_s7 + $0x8c] sm:$0x3]  ;;  %v2476_v54 = vld [vmem:[%s2700_s7 + $0x10] ss:$36 sps:$4 sm:$0xff]  }
  0x15   : > { %v223_v26 = vld [vmem:[%s2700_s7 + $0x68] sm:$0xf]  ;;  %v2723_v31 = vld [vmem:[%s3140_s1 + $0x40] sm:$0xff]   ;;  %405 = vmatprep.mubr.bf16.mxu0 %v2458_v24  ;;  %v228_v32 = vunpack.c.l.bf16 %v224_v29  ;;  %v256_v34 = vld [vmem:[%s2700_s7 + $0x6c] sm:$0x33] }
  0x16   : > { %1904 = vmatpush3.bf16.msra.mxu0 %v2614_v9  ;;  %2246 = vmatpush3.bf16.msra.mxu1 %v2607_v8  ;;  %v227_v30 = vunpack.c.l.bf16 %v223_v26  ;;  %230 = vst [vmem:[#allocation2 + $0x1] sm:$0xff] %v225_v27  ;;  %231 = vst [vmem:[#allocation2 + $0x9] sm:$0xff] %v226_v28  ;;  %v2728_v33 = vld [vmem:[%s2700_s7 + $0x48] sm:$0xff]  ;;  %v2456_v35 = vld [vmem:[%s2700_s7] ss:$36 sps:$4 sm:$0xff]  }
  0x17   : > { %1905 = vmatprep.subr.bf16.mxu0 %v2621_v10  ;;  %2247 = vmatprep.subr.bf16.mxu1 %v2626_v11  ;;  %233 = vst [vmem:[#allocation2 + $0x19] sm:$0x3] %v228_v32  ;;  %v1801_v36 = vcombine.high %v2728_v33, %v256_v34  ;;  %v2461_v43 = vld [vmem:[%s2700_s7 + $0x8] ss:$36 sps:$4 sm:$0xff]   ;;  %v1800_v44 = vcombine.low %v2728_v33, %v256_v34  ;;  %v2484_v60 = vld [vmem:[%s2700_s7 + $0x14] ss:$36 sps:$4 sm:$0xff]   ;;  %vm3106_vm2 = vmand %vm836_vm0, %vm837_vm1 }
  0x18   : > { %232 = vst [vmem:[#allocation2 + $0x11] sm:$0xff] %v227_v30  ;;  %v525_v45 = vld [vmem:[%s2700_s7 + $0x6c] sm:$0x33]  ;;  %v2465_v51 = vld [vmem:[%s2700_s7 + $0x4] ss:$36 sps:$4 sm:$0xff]  }
  0x19   : > { %v1830_v46 = vcombine.high %v2728_v33, %v525_v45  ;;  %v2468_v48 = vld [vmem:[%s2700_s7 + $0xc] ss:$36 sps:$4 sm:$0xff]   ;;  %v1829_v49 = vcombine.low %v2728_v33, %v525_v45  ;;  %v2469_v53 = vld [vmem:[%s2700_s7 + $0x54] ss:$36 sps:$4 sm:$0x3f]  }
  0x1a   : > { %1906 = vmatpush3.bf16.msra.mxu0 %v2633_v12  ;;  %2248 = vmatpush3.bf16.msra.mxu1 %v2626_v11  ;;  %v2467_v50 = vld [vmem:[%s2700_s7 + $0x8] ss:$36 sps:$4 sm:$0xff]   ;;  %v2478_v58 = vld [vmem:[%s2700_s7 + $0x54] ss:$36 sps:$4 sm:$0x3f]  }
  0x1b   : > { %1907 = vmatprep.subr.bf16.mxu0 %v2640_v13  ;;  %2249 = vmatprep.subr.bf16.mxu1 %v2647_v14  ;;  %v2472_v55 = vld [vmem:[%s2700_s7 + $0x4c] ss:$36 sps:$4 sm:$0x3f]   ;;  %v2477_v59 = vld [vmem:[%s2700_s7 + $0x58] ss:$36 sps:$4 sm:$0x3f]  }
  0x1c   : > { %v2475_v56 = vld [vmem:[%s2700_s7 + $0xc] ss:$36 sps:$4 sm:$0xff]   ;;  %v234_v63 = vld [vmem:[%s2700_s7] ss:$36 sps:$4 sm:$0xff]   ;;  %v236_v3 = vld [vmem:[%s2700_s7 + $0x48] sm:$0xf] }
  0x1d   : > { %v247_v37 = vld [vmem:[#allocation2] sm:$0xff]  ;;  %v248_v38 = vld [vmem:[#allocation2 + $0x8] sm:$0xff]  ;;  %v2480_v61 = vld [vmem:[%s2700_s7 + $0x50] ss:$36 sps:$4 sm:$0x3f]   ;;  %v239_v25 = vunpack.c.h.bf16 %v234_v63  ;;  %v240_v26 = vunpack.c.l.bf16 %v236_v3 }
  0x1e   : > { %1908 = vmatpush3.bf16.msra.mxu0 %v2656_v15  ;;  %2250 = vmatpush3.bf16.msra.mxu1 %v2647_v14  ;;  %v251_v40 = vpack.c.bf16 %v248_v38, %v247_v37  ;;  %v2473_v57 = vld [vmem:[%s2700_s7 + $0x8] ss:$36 sps:$4 sm:$0xff]   ;;  %v2483_v62 = vld [vmem:[%s2700_s7 + $0x10] ss:$36 sps:$4 sm:$0xff]   ;;  %v2492_v33 = vld [vmem:[%s2700_s7 + $0x18] ss:$36 sps:$4 sm:$0xff]  }
  0x1f   : > { %1909 = vmatprep.subr.bf16.mxu0 %v2663_v16  ;;  %2251 = vmatprep.subr.bf16.mxu1 %v2670_v17  ;;  %v249_v39 = vld [vmem:[#allocation2 + $0x10] sm:$0xff]  ;;  %v250_v41 = vld [vmem:[#allocation2 + $0x18] sm:$0x7]  ;;  %v237_v27 = vld [vmem:[%s2700_s7 + $0x6c] sm:$0x3]  ;;  %243 = vst [vmem:[#allocation3 + $0x7] sm:$0xff] %v239_v25 }
  0x20   : > { %v252_v42 = vpack.c.bf16 %v250_v41, %v249_v39  ;;  %2257 = vmatprep.mubr.bf16.mxu1 %v251_v40  ;;  %v241_v28 = vunpack.c.l.bf16 %v237_v27  ;;  %244 = vst [vmem:[#allocation3 + $0xf] sm:$0xff] %v240_v26  ;;  %v2481_v29 = vld [vmem:[%s2700_s7 + $0xc] ss:$36 sps:$4 sm:$0xff]   ;;  %v2486_v30 = vld [vmem:[%s2700_s7 + $0x58] ss:$36 sps:$4 sm:$0x3f]  }
  0x21   : > { %v2485_v32 = vld [vmem:[%s2700_s7 + $0x5c] ss:$36 sps:$4 sm:$0x3f]   ;;  %v2488_v34 = vld [vmem:[%s2700_s7 + $0x54] ss:$36 sps:$4 sm:$0x3f]  }
  0x22   : > { %1910 = vmatpush3.bf16.msra.mxu0 %v2676_v18  ;;  %2252 = vmatpush3.bf16.msra.mxu1 %v2670_v17  ;;  %245 = vst [vmem:[#allocation3 + $0x17] sm:$0x7] %v241_v28  ;;  %v2494_v37 = vld [vmem:[%s2700_s7 + $0x5c] ss:$36 sps:$4 sm:$0x3f]   ;;  %v2524_v25 = vld [vmem:[%s3140_s1 + $0xa8] sm:$0xff]  }
  0x23   : > { %1911 = vmatprep.subr.bf16.mxu0 %v2683_v19  ;;  %2253 = vmatprep.subr.bf16.mxu1 %v2690_v20  ;;  %v2493_v38 = vld [vmem:[%s2700_s7 + $0x60] ss:$36 sps:$4 sm:$0x3f]   ;;  %v2496_v40 = vld [vmem:[%s2700_s7 + $0x58] ss:$36 sps:$4 sm:$0x3f]  }
  0x24   : > { %v2500_v39 = vld [vmem:[%s2700_s7 + $0x1c] ss:$36 sps:$4 sm:$0xff]  }
  0x25   : > { %v2499_v41 = vld [vmem:[%s2700_s7 + $0x18] ss:$36 sps:$4 sm:$0xff]   ;;  %v2508_v45 = vld [vmem:[%s2700_s7 + $0x20] ss:$36 sps:$4 sm:$0xff]  }
  0x26   : > { %1912 = vmatpush3.bf16.msra.mxu0 %v2695_v21  ;;  %2254 = vmatpush3.bf16.msra.mxu1 %v2690_v20 }
  0x27   : > { %1913 = vmatprep.subr.bf16.mxu0 %v2705_v22  ;;  %2255 = vmatprep.subr.bf16.mxu1 %v2712_v23 }
  0x2a   : > { %1914 = vmatpush3.bf16.msra.mxu0 %v2723_v31  ;;  %2256 = vmatpush3.bf16.msra.mxu1 %v2712_v23 }
  0x2b   : > { %1937 = vmatprep.subr.bf16.mxu0 %v2577_v2  ;;  %2261 = vmatprep.subr.bf16.mxu1 %v2566_v0 }
  0x2d   : > { %406 = vmatmul.mubr.bf16.vlgmr.msra.gmra.mxu0 %v2456_v35  ;;  %2258 = vmatmul.mubr.bf16.vlgmr.msra.gmra.mxu1 %v252_v42  ;;  %v2497_v42 = vld [vmem:[%s2700_s7 + $0x14] ss:$36 sps:$4 sm:$0xff]  }
  0x2e   : > { %1938 = vmatpush3.bf16.msra.mxu0 %v2571_v1  ;;  %413 = vmatprep.mubr.bf16.mxu0 %v1801_v36  ;;  %v2489_v36 = vld [vmem:[%s2700_s7 + $0x10] ss:$36 sps:$4 sm:$0xff]  }
  0x2f   : > { %1939 = vmatprep.subr.bf16.mxu0 %v2596_v6  ;;  %2262 = vmatpush3.bf16.msra.mxu1 %v2566_v0 }
  0x30   : > { %2263 = vmatprep.subr.bf16.mxu1 %v2583_v4  ;;  %2277 = vmatprep.mubr.bf16.mxu1 %v2461_v43  ;;  %v2502_v43 = vld [vmem:[%s2700_s7 + $0x60] ss:$36 sps:$4 sm:$0x3f]  }
  0x32   : > { %1940 = vmatpush3.bf16.msra.mxu0 %v2590_v5 }
  0x33   : > { %1941 = vmatprep.subr.bf16.mxu0 %v2614_v9  ;;  %2264 = vmatpush3.bf16.msra.mxu1 %v2583_v4 }
  0x34   : > { %2265 = vmatprep.subr.bf16.mxu1 %v2602_v7 }
  0x35   : > { %414 = vmatmul.mubr.bf16.gmra.mxu0 %v1800_v44  ;;  %v2501_v44 = vld [vmem:[%s2700_s7 + $0x64] ss:$36 sps:$4 sm:$0x3f]  }
  0x36   : > { %1942 = vmatpush3.bf16.msra.mxu0 %v2607_v8  ;;  %591 = vmatprep.mubr.bf16.mxu0 %v2458_v24  ;;  %v238_v24 = vunpack.c.l.bf16 %v234_v63 }
  0x37   : > { %1943 = vmatprep.subr.bf16.mxu0 %v2633_v12  ;;  %2266 = vmatpush3.bf16.msra.mxu1 %v2602_v7 }
  0x38   : > { %2267 = vmatprep.subr.bf16.mxu1 %v2621_v10  ;;  %242 = vst [vmem:[#allocation3 - $0x1] sm:$0xfe] %v238_v24  ;;  %v2523_v24 = vld [vmem:[%s3140_s1 + $0x30] sm:$0xff]  }
  0x3a   : > { %1944 = vmatpush3.bf16.msra.mxu0 %v2626_v11 }
  0x3b   : > { %1945 = vmatprep.subr.bf16.mxu0 %v2656_v15  ;;  %2268 = vmatpush3.bf16.msra.mxu1 %v2621_v10 }
  0x3c   : > { %2269 = vmatprep.subr.bf16.mxu1 %v2640_v13 }
  0x3e   : > { %1946 = vmatpush3.bf16.msra.mxu0 %v2647_v14 }
  0x3f   : > { %1947 = vmatprep.subr.bf16.mxu0 %v2676_v18  ;;  %2270 = vmatpush3.bf16.msra.mxu1 %v2640_v13 }
  0x40   : > { %2271 = vmatprep.subr.bf16.mxu1 %v2663_v16 }
  0x42   : > { %1948 = vmatpush3.bf16.msra.mxu0 %v2670_v17 }
  0x43   : > { %1949 = vmatprep.subr.bf16.mxu0 %v2695_v21  ;;  %2272 = vmatpush3.bf16.msra.mxu1 %v2663_v16 }
  0x44   : > { %2273 = vmatprep.subr.bf16.mxu1 %v2683_v19 }
  0x46   : > { %1950 = vmatpush3.bf16.msra.mxu0 %v2690_v20 }
  0x47   : > { %1951 = vmatprep.subr.bf16.mxu0 %v2723_v31  ;;  %2274 = vmatpush3.bf16.msra.mxu1 %v2683_v19 }
  0x48   : > { %2275 = vmatprep.subr.bf16.mxu1 %v2705_v22 }
  0x4a   : > { %1952 = vmatpush3.bf16.msra.mxu0 %v2712_v23 }
  0x4b   : > { %1975 = vmatprep.subr.bf16.mxu0 %v2577_v2  ;;  %2276 = vmatpush3.bf16.msra.mxu1 %v2705_v22 }
  0x4c   : > { %2281 = vmatprep.subr.bf16.mxu1 %v2566_v0 }
  0x4d   : > { %592 = vmatmul.mubr.bf16.vlgmr.msra.gmra.mxu0 %v2456_v35  ;;  %v2491_v35 = vld [vmem:[%s2700_s7 + $0x14] ss:$36 sps:$4 sm:$0xff]  }
  0x4e   : > { %1976 = vmatpush3.bf16.msra.mxu0 %v2571_v1  ;;  %599 = vmatprep.mubr.bf16.mxu0 %v1830_v46 }
  0x4f   : > { %1977 = vmatprep.subr.bf16.mxu0 %v2596_v6  ;;  %2278 = vmatmul.mubr.bf16.vlgmr.msra.gmra.mxu1 %v2462_v47  ;;  %v2504_v47 = vld [vmem:[%s2700_s7 + $0x5c] ss:$36 sps:$4 sm:$0x3f]  }
  0x50   : > { %2282 = vmatpush3.bf16.msra.mxu1 %v2566_v0  ;;  %2297 = vmatprep.mubr.bf16.mxu1 %v2468_v48 }
  0x51   : > { %2283 = vmatprep.subr.bf16.mxu1 %v2583_v4 }
  0x52   : > { %1978 = vmatpush3.bf16.msra.mxu0 %v2590_v5 }
  0x53   : > { %1979 = vmatprep.subr.bf16.mxu0 %v2614_v9 }
  0x54   : > { %2284 = vmatpush3.bf16.msra.mxu1 %v2583_v4 }
  0x55   : > { %600 = vmatmul.mubr.bf16.gmra.mxu0 %v1829_v49  ;;  %2285 = vmatprep.subr.bf16.mxu1 %v2602_v7 }
  0x56   : > { %1980 = vmatpush3.bf16.msra.mxu0 %v2607_v8  ;;  %733 = vmatprep.mubr.bf16.mxu0 %v2467_v50  ;;  %v2505_v50 = vld [vmem:[%s2700_s7 + $0x18] ss:$36 sps:$4 sm:$0xff]  }
  0x57   : > { %1981 = vmatprep.subr.bf16.mxu0 %v2633_v12 }
  0x58   : > { %2286 = vmatpush3.bf16.msra.mxu1 %v2602_v7 }
  0x59   : > { %2287 = vmatprep.subr.bf16.mxu1 %v2621_v10 }
  0x5a   : > { %1982 = vmatpush3.bf16.msra.mxu0 %v2626_v11 }
  0x5b   : > { %1983 = vmatprep.subr.bf16.mxu0 %v2656_v15 }
  0x5c   : > { %2288 = vmatpush3.bf16.msra.mxu1 %v2621_v10 }
  0x5d   : > { %2289 = vmatprep.subr.bf16.mxu1 %v2640_v13 }
  0x5e   : > { %1984 = vmatpush3.bf16.msra.mxu0 %v2647_v14 }
  0x5f   : > { %1985 = vmatprep.subr.bf16.mxu0 %v2676_v18 }
  0x60   : > { %2290 = vmatpush3.bf16.msra.mxu1 %v2640_v13 }
  0x61   : > { %2291 = vmatprep.subr.bf16.mxu1 %v2663_v16 }
  0x62   : > { %1986 = vmatpush3.bf16.msra.mxu0 %v2670_v17 }
  0x63   : > { %1987 = vmatprep.subr.bf16.mxu0 %v2695_v21 }
  0x64   : > { %2292 = vmatpush3.bf16.msra.mxu1 %v2663_v16 }
  0x65   : > { %2293 = vmatprep.subr.bf16.mxu1 %v2683_v19 }
  0x66   : > { %1988 = vmatpush3.bf16.msra.mxu0 %v2690_v20 }
  0x67   : > { %1989 = vmatprep.subr.bf16.mxu0 %v2723_v31 }
  0x68   : > { %2294 = vmatpush3.bf16.msra.mxu1 %v2683_v19 }
  0x69   : > { %2295 = vmatprep.subr.bf16.mxu1 %v2705_v22 }
  0x6a   : > { %1990 = vmatpush3.bf16.msra.mxu0 %v2712_v23 }
  0x6b   : > { %2013 = vmatprep.subr.bf16.mxu0 %v2577_v2 }
  0x6c   : > { %2296 = vmatpush3.bf16.msra.mxu1 %v2705_v22 }
  0x6d   : > { %734 = vmatmul.mubr.bf16.vlgmr.msra.gmra.mxu0 %v2465_v51  ;;  %2301 = vmatprep.subr.bf16.mxu1 %v2566_v0  ;;  %v2519_v51 = vld [vmem:[%s3140_s1 + $0xb8] sm:$0xff]  }
  0x6e   : > { %2014 = vmatpush3.bf16.msra.mxu0 %v2571_v1  ;;  %741 = vmatprep.mubr.bf16.mxu0 %v2470_v52  ;;  %v2510_v52 = vld [vmem:[%s2700_s7 + $0x64] ss:$36 sps:$4 sm:$0x3f]  }
  0x6f   : > { %2015 = vmatprep.subr.bf16.mxu0 %v2596_v6  ;;  %2298 = vmatmul.mubr.bf16.vlgmr.msra.gmra.mxu1 %v2469_v53 }
  0x70   : > { %2302 = vmatpush3.bf16.msra.mxu1 %v2566_v0  ;;  %2317 = vmatprep.mubr.bf16.mxu1 %v2476_v54  ;;  %v2509_v54 = vld [vmem:[%s2700_s7 + $0x68] ss:$36 sps:$4 sm:$0x3f]  }
  0x71   : > { %2303 = vmatprep.subr.bf16.mxu1 %v2583_v4 }
  0x72   : > { %2016 = vmatpush3.bf16.msra.mxu0 %v2590_v5 }
  0x73   : > { %2017 = vmatprep.subr.bf16.mxu0 %v2614_v9 }
  0x74   : > { %2304 = vmatpush3.bf16.msra.mxu1 %v2583_v4 }
  0x75   : > { %742 = vmatmul.mubr.bf16.gmra.mxu0 %v2472_v55  ;;  %2305 = vmatprep.subr.bf16.mxu1 %v2602_v7 }
  0x76   : > { %2018 = vmatpush3.bf16.msra.mxu0 %v2607_v8  ;;  %914 = vmatprep.mubr.bf16.mxu0 %v2475_v56  ;;  %v2520_v56 = vld [vmem:[%s3140_s1 + $0x78] sm:$0xff]  }
  0x77   : > { %2019 = vmatprep.subr.bf16.mxu0 %v2633_v12 }
  0x78   : > { %2306 = vmatpush3.bf16.msra.mxu1 %v2602_v7 }
  0x79   : > { %2307 = vmatprep.subr.bf16.mxu1 %v2621_v10 }
  0x7a   : > { %2020 = vmatpush3.bf16.msra.mxu0 %v2626_v11 }
  0x7b   : > { %2021 = vmatprep.subr.bf16.mxu0 %v2656_v15 }
  0x7c   : > { %2308 = vmatpush3.bf16.msra.mxu1 %v2621_v10 }
  0x7d   : > { %2309 = vmatprep.subr.bf16.mxu1 %v2640_v13 }
  0x7e   : > { %2022 = vmatpush3.bf16.msra.mxu0 %v2647_v14 }
  0x7f   : > { %2023 = vmatprep.subr.bf16.mxu0 %v2676_v18 }
  0x80   : > { %2310 = vmatpush3.bf16.msra.mxu1 %v2640_v13 }
  0x81   : > { %2311 = vmatprep.subr.bf16.mxu1 %v2663_v16 }
  0x82   : > { %2024 = vmatpush3.bf16.msra.mxu0 %v2670_v17 }
  0x83   : > { %2025 = vmatprep.subr.bf16.mxu0 %v2695_v21 }
  0x84   : > { %2312 = vmatpush3.bf16.msra.mxu1 %v2663_v16 }
  0x85   : > { %2313 = vmatprep.subr.bf16.mxu1 %v2683_v19 }
  0x86   : > { %2026 = vmatpush3.bf16.msra.mxu0 %v2690_v20 }
  0x87   : > { %2027 = vmatprep.subr.bf16.mxu0 %v2723_v31 }
  0x88   : > { %2314 = vmatpush3.bf16.msra.mxu1 %v2683_v19 }
  0x89   : > { %2315 = vmatprep.subr.bf16.mxu1 %v2705_v22 }
  0x8a   : > { %2028 = vmatpush3.bf16.msra.mxu0 %v2712_v23 }
  0x8b   : > { %2051 = vmatprep.subr.bf16.mxu0 %v2577_v2 }
  0x8c   : > { %2316 = vmatpush3.bf16.msra.mxu1 %v2705_v22 }
  0x8d   : > { %915 = vmatmul.mubr.bf16.vlgmr.msra.gmra.mxu0 %v2473_v57  ;;  %2321 = vmatprep.subr.bf16.mxu1 %v2566_v0  ;;  %v2515_v57 = vld [vmem:[%s2700_s7 + $0x20] ss:$36 sps:$4 sm:$0xff]  }
  0x8e   : > { %2052 = vmatpush3.bf16.msra.mxu0 %v2571_v1  ;;  %922 = vmatprep.mubr.bf16.mxu0 %v2478_v58  ;;  %v2512_v58 = vld [vmem:[%s2700_s7 + $0x60] ss:$36 sps:$4 sm:$0x3f]  }
  0x8f   : > { %2053 = vmatprep.subr.bf16.mxu0 %v2596_v6  ;;  %2318 = vmatmul.mubr.bf16.vlgmr.msra.gmra.mxu1 %v2477_v59  ;;  %v1578_v59 = vld [vmem:[#allocation3] sm:$0xff] }
  0x90   : > { %2322 = vmatpush3.bf16.msra.mxu1 %v2566_v0  ;;  %2337 = vmatprep.mubr.bf16.mxu1 %v2484_v60  ;;  %v1579_v60 = vld [vmem:[#allocation3 + $0x8] sm:$0xff] }
  0x91   : > { %2323 = vmatprep.subr.bf16.mxu1 %v2583_v4 }
  0x92   : > { %2054 = vmatpush3.bf16.msra.mxu0 %v2590_v5 }
  0x93   : > { %2055 = vmatprep.subr.bf16.mxu0 %v2614_v9 }
  0x94   : > { %2324 = vmatpush3.bf16.msra.mxu1 %v2583_v4 }
  0x95   : > { %923 = vmatmul.mubr.bf16.gmra.mxu0 %v2480_v61  ;;  %2325 = vmatprep.subr.bf16.mxu1 %v2602_v7  ;;  %v2521_v61 = vld [vmem:[%s3140_s1 + $0x38] sm:$0xff]  }
  0x96   : > { %2056 = vmatpush3.bf16.msra.mxu0 %v2607_v8  ;;  %1052 = vmatprep.mubr.bf16.mxu0 %v2483_v62  ;;  %v2522_v62 = vld [vmem:[%s3140_s1 + $0xb0] sm:$0xff]  }
  0x97   : > { %2057 = vmatprep.subr.bf16.mxu0 %v2633_v12 }
  0x98   : > { %2326 = vmatpush3.bf16.msra.mxu1 %v2602_v7 }
  0x99   : > { %2327 = vmatprep.subr.bf16.mxu1 %v2621_v10 }
  0x9a   : > { %2058 = vmatpush3.bf16.msra.mxu0 %v2626_v11 }
  0x9b   : > { %2059 = vmatprep.subr.bf16.mxu0 %v2656_v15 }
  0x9c   : > { %2328 = vmatpush3.bf16.msra.mxu1 %v2621_v10 }
  0x9d   : > { %2329 = vmatprep.subr.bf16.mxu1 %v2640_v13 }
  0x9e   : > { %2060 = vmatpush3.bf16.msra.mxu0 %v2647_v14 }
  0x9f   : > { %2061 = vmatprep.subr.bf16.mxu0 %v2676_v18 }
  0xa0   : > { %2330 = vmatpush3.bf16.msra.mxu1 %v2640_v13 }
  0xa1   : > { %2331 = vmatprep.subr.bf16.mxu1 %v2663_v16 }
  0xa2   : > { %2062 = vmatpush3.bf16.msra.mxu0 %v2670_v17 }
  0xa3   : > { %2063 = vmatprep.subr.bf16.mxu0 %v2695_v21 }
  0xa4   : > { %2332 = vmatpush3.bf16.msra.mxu1 %v2663_v16 }
  0xa5   : > { %2333 = vmatprep.subr.bf16.mxu1 %v2683_v19 }
  0xa6   : > { %2064 = vmatpush3.bf16.msra.mxu0 %v2690_v20 }
  0xa7   : > { %2065 = vmatprep.subr.bf16.mxu0 %v2723_v31 }
  0xa8   : > { %2334 = vmatpush3.bf16.msra.mxu1 %v2683_v19 }
  0xa9   : > { %2335 = vmatprep.subr.bf16.mxu1 %v2705_v22 }
  0xaa   : > { %2066 = vmatpush3.bf16.msra.mxu0 %v2712_v23 }
  0xab   : > { %2089 = vmatprep.subr.bf16.mxu0 %v2577_v2 }
  0xac   : > { %2336 = vmatpush3.bf16.msra.mxu1 %v2705_v22 }
  0xad   : > { %1053 = vmatmul.mubr.bf16.vlgmr.msra.gmra.mxu0 %v2481_v29  ;;  %2341 = vmatprep.subr.bf16.mxu1 %v2566_v0 }
  0xae   : > { %2090 = vmatpush3.bf16.msra.mxu0 %v2571_v1  ;;  %1060 = vmatprep.mubr.bf16.mxu0 %v2486_v30 }
  0xaf   : > { %2091 = vmatprep.subr.bf16.mxu0 %v2596_v6  ;;  %2338 = vmatmul.mubr.bf16.vlgmr.msra.gmra.mxu1 %v2485_v32 }
  0xb0   : > { %2342 = vmatpush3.bf16.msra.mxu1 %v2566_v0  ;;  %2357 = vmatprep.mubr.bf16.mxu1 %v2492_v33 }
  0xb1   : > { %2343 = vmatprep.subr.bf16.mxu1 %v2583_v4 }
  0xb2   : > { %2092 = vmatpush3.bf16.msra.mxu0 %v2590_v5 }
  0xb3   : > { %2093 = vmatprep.subr.bf16.mxu0 %v2614_v9 }
  0xb4   : > { %2344 = vmatpush3.bf16.msra.mxu1 %v2583_v4 }
  0xb5   : > { %1061 = vmatmul.mubr.bf16.gmra.mxu0 %v2488_v34  ;;  %2345 = vmatprep.subr.bf16.mxu1 %v2602_v7 }
  0xb6   : > { %2094 = vmatpush3.bf16.msra.mxu0 %v2607_v8  ;;  %1194 = vmatprep.mubr.bf16.mxu0 %v2491_v35 }
  0xb7   : > { %2095 = vmatprep.subr.bf16.mxu0 %v2633_v12 }
  0xb8   : > { %2346 = vmatpush3.bf16.msra.mxu1 %v2602_v7 }
  0xb9   : > { %2347 = vmatprep.subr.bf16.mxu1 %v2621_v10 }
  0xba   : > { %2096 = vmatpush3.bf16.msra.mxu0 %v2626_v11 }
  0xbb   : > { %2097 = vmatprep.subr.bf16.mxu0 %v2656_v15 }
  0xbc   : > { %2348 = vmatpush3.bf16.msra.mxu1 %v2621_v10 }
  0xbd   : > { %2349 = vmatprep.subr.bf16.mxu1 %v2640_v13 }
  0xbe   : > { %2098 = vmatpush3.bf16.msra.mxu0 %v2647_v14 }
  0xbf   : > { %2099 = vmatprep.subr.bf16.mxu0 %v2676_v18 }
  0xc0   : > { %2350 = vmatpush3.bf16.msra.mxu1 %v2640_v13 }
  0xc1   : > { %2351 = vmatprep.subr.bf16.mxu1 %v2663_v16 }
  0xc2   : > { %2100 = vmatpush3.bf16.msra.mxu0 %v2670_v17 }
  0xc3   : > { %2101 = vmatprep.subr.bf16.mxu0 %v2695_v21 }
  0xc4   : > { %2352 = vmatpush3.bf16.msra.mxu1 %v2663_v16 }
  0xc5   : > { %2353 = vmatprep.subr.bf16.mxu1 %v2683_v19 }
  0xc6   : > { %2102 = vmatpush3.bf16.msra.mxu0 %v2690_v20 }
  0xc7   : > { %2103 = vmatprep.subr.bf16.mxu0 %v2723_v31 }
  0xc8   : > { %2354 = vmatpush3.bf16.msra.mxu1 %v2683_v19 }
  0xc9   : > { %2355 = vmatprep.subr.bf16.mxu1 %v2705_v22 }
  0xca   : > { %2104 = vmatpush3.bf16.msra.mxu0 %v2712_v23 }
  0xcb   : > { %2127 = vmatprep.subr.bf16.mxu0 %v2577_v2 }
  0xcc   : > { %2356 = vmatpush3.bf16.msra.mxu1 %v2705_v22 }
  0xcd   : > { %1195 = vmatmul.mubr.bf16.vlgmr.msra.gmra.mxu0 %v2489_v36  ;;  %2361 = vmatprep.subr.bf16.mxu1 %v2566_v0 }
  0xce   : > { %2128 = vmatpush3.bf16.msra.mxu0 %v2571_v1  ;;  %1202 = vmatprep.mubr.bf16.mxu0 %v2494_v37 }
  0xcf   : > { %2129 = vmatprep.subr.bf16.mxu0 %v2596_v6  ;;  %2358 = vmatmul.mubr.bf16.vlgmr.msra.gmra.mxu1 %v2493_v38 }
  0xd0   : > { %2362 = vmatpush3.bf16.msra.mxu1 %v2566_v0  ;;  %2377 = vmatprep.mubr.bf16.mxu1 %v2500_v39 }
  0xd1   : > { %2363 = vmatprep.subr.bf16.mxu1 %v2583_v4 }
  0xd2   : > { %2130 = vmatpush3.bf16.msra.mxu0 %v2590_v5 }
  0xd3   : > { %2131 = vmatprep.subr.bf16.mxu0 %v2614_v9 }
  0xd4   : > { %2364 = vmatpush3.bf16.msra.mxu1 %v2583_v4 }
  0xd5   : > { %1203 = vmatmul.mubr.bf16.gmra.mxu0 %v2496_v40  ;;  %2365 = vmatprep.subr.bf16.mxu1 %v2602_v7 }
  0xd6   : > { %2132 = vmatpush3.bf16.msra.mxu0 %v2607_v8  ;;  %1366 = vmatprep.mubr.bf16.mxu0 %v2499_v41 }
  0xd7   : > { %2133 = vmatprep.subr.bf16.mxu0 %v2633_v12 }
  0xd8   : > { %2366 = vmatpush3.bf16.msra.mxu1 %v2602_v7 }
  0xd9   : > { %2367 = vmatprep.subr.bf16.mxu1 %v2621_v10 }
  0xda   : > { %2134 = vmatpush3.bf16.msra.mxu0 %v2626_v11 }
  0xdb   : > { %2135 = vmatprep.subr.bf16.mxu0 %v2656_v15 }
  0xdc   : > { %2368 = vmatpush3.bf16.msra.mxu1 %v2621_v10 }
  0xdd   : > { %2369 = vmatprep.subr.bf16.mxu1 %v2640_v13 }
  0xde   : > { %2136 = vmatpush3.bf16.msra.mxu0 %v2647_v14 }
  0xdf   : > { %2137 = vmatprep.subr.bf16.mxu0 %v2676_v18 }
  0xe0   : > { %2370 = vmatpush3.bf16.msra.mxu1 %v2640_v13 }
  0xe1   : > { %2371 = vmatprep.subr.bf16.mxu1 %v2663_v16 }
  0xe2   : > { %2138 = vmatpush3.bf16.msra.mxu0 %v2670_v17 }
  0xe3   : > { %2139 = vmatprep.subr.bf16.mxu0 %v2695_v21 }
  0xe4   : > { %2372 = vmatpush3.bf16.msra.mxu1 %v2663_v16 }
  0xe5   : > { %2373 = vmatprep.subr.bf16.mxu1 %v2683_v19 }
  0xe6   : > { %2140 = vmatpush3.bf16.msra.mxu0 %v2690_v20 }
  0xe7   : > { %2141 = vmatprep.subr.bf16.mxu0 %v2723_v31 }
  0xe8   : > { %2374 = vmatpush3.bf16.msra.mxu1 %v2683_v19 }
  0xe9   : > { %2375 = vmatprep.subr.bf16.mxu1 %v2705_v22 }
  0xea   : > { %2142 = vmatpush3.bf16.msra.mxu0 %v2712_v23 }
  0xeb   : > { %2165 = vmatprep.subr.bf16.mxu0 %v2577_v2  ;;  %v2507_v2 = vld [vmem:[%s2700_s7 + $0x1c] ss:$36 sps:$4 sm:$0xff]  }
  0xec   : > { %2376 = vmatpush3.bf16.msra.mxu1 %v2705_v22 }
  0xed   : > { %1367 = vmatmul.mubr.bf16.vlgmr.msra.gmra.mxu0 %v2497_v42  ;;  %2381 = vmatprep.subr.bf16.mxu1 %v2566_v0  ;;  %v2972_v46 = vpop.f32.mrf.mxu0  ;;  %v3040_v3 = vpop.f32.mrf.mxu1 }
  0xee   : > { %2166 = vmatpush3.bf16.msra.mxu0 %v2571_v1  ;;  %1374 = vmatprep.mubr.bf16.mxu0 %v2502_v43 }
  0xef   : > { %2167 = vmatprep.subr.bf16.mxu0 %v2596_v6  ;;  %2378 = vmatmul.mubr.bf16.vlgmr.msra.gmra.mxu1 %v2501_v44  ;;  %v2980_v1 = vpop.f32.mrf.mxu0 }
  0xf0   : > { %2382 = vmatpush3.bf16.msra.mxu1 %v2566_v0  ;;  %2397 = vmatprep.mubr.bf16.mxu1 %v2508_v45  ;;  %v1917_v33 = vadd.f32 %v2980_v1, %v2972_v46 }
  0xf1   : > { %2383 = vmatprep.subr.bf16.mxu1 %v2583_v4  ;;  %v2986_v0 = vpop.f32.mrf.mxu0 }
  0xf2   : > { %2168 = vmatpush3.bf16.msra.mxu0 %v2590_v5 }
  0xf3   : > { %2169 = vmatprep.subr.bf16.mxu0 %v2614_v9  ;;  %v2992_v5 = vpop.f32.mrf.mxu0 }
  0xf4   : > { %2384 = vmatpush3.bf16.msra.mxu1 %v2583_v4  ;;  %v1920_v40 = vadd.f32 %v2992_v5, %v2986_v0  ;;  %v2518_v0 = vld [vmem:[%s2700_s7 + $0x64] ss:$36 sps:$4 sm:$0x3f]  }
  0xf5   : > { %1375 = vmatmul.mubr.bf16.gmra.mxu0 %v2504_v47  ;;  %2385 = vmatprep.subr.bf16.mxu1 %v2602_v7 }
  0xf6   : > { %2170 = vmatpush3.bf16.msra.mxu0 %v2607_v8  ;;  %1504 = vmatprep.mubr.bf16.mxu0 %v2507_v2  ;;  %v2998_v8 = vpop.f32.mrf.mxu0  ;;  %v3086_v2 = vld [vmem:[%s3141_s2] ss:$0 sm:$0xff] }
  0xf7   : > { %2171 = vmatprep.subr.bf16.mxu0 %v2633_v12 }
  0xf8   : > { %2386 = vmatpush3.bf16.msra.mxu1 %v2602_v7  ;;  %v3004_v48 = vpop.f32.mrf.mxu0 }
  0xf9   : > { %2387 = vmatprep.subr.bf16.mxu1 %v2621_v10  ;;  %v1923_v41 = vadd.f32 %v3004_v48, %v2998_v8 }
  0xfa   : > { %2172 = vmatpush3.bf16.msra.mxu0 %v2626_v11  ;;  %v3010_v49 = vpop.f32.mrf.mxu0 }
  0xfb   : > { %2173 = vmatprep.subr.bf16.mxu0 %v2656_v15  ;;  %v513_v8 = vadd.f32 %v3040_v3, %v1923_v41 }
  0xfc   : > { %2388 = vmatpush3.bf16.msra.mxu1 %v2621_v10  ;;  %v3020_v53 = vpop.f32.mrf.mxu0 }
  0xfd   : > { %2389 = vmatprep.subr.bf16.mxu1 %v2640_v13  ;;  %v1926_v48 = vadd.f32 %v3020_v53, %v3010_v49 }
  0xfe   : > { %2174 = vmatpush3.bf16.msra.mxu0 %v2647_v14 }
  0xff   : > { %2175 = vmatprep.subr.bf16.mxu0 %v2676_v18 }
 0x100   : > { %2390 = vmatpush3.bf16.msra.mxu1 %v2640_v13 }
 0x101   : > { %2391 = vmatprep.subr.bf16.mxu1 %v2663_v16 }
 0x102   : > { %2176 = vmatpush3.bf16.msra.mxu0 %v2670_v17 }
 0x103   : > { %2177 = vmatprep.subr.bf16.mxu0 %v2695_v21 }
 0x104   : > { %2392 = vmatpush3.bf16.msra.mxu1 %v2663_v16 }
 0x105   : > { %2393 = vmatprep.subr.bf16.mxu1 %v2683_v19 }
 0x106   : > { %2178 = vmatpush3.bf16.msra.mxu0 %v2690_v20 }
 0x107   : > { %2179 = vmatprep.subr.bf16.mxu0 %v2723_v31 }
 0x108   : > { %2394 = vmatpush3.bf16.msra.mxu1 %v2683_v19 }
 0x109   : > { %2395 = vmatprep.subr.bf16.mxu1 %v2705_v22 }
 0x10a   : > { %2180 = vmatpush3.bf16.msra.mxu0 %v2712_v23 }
 0x10b   : > { %2401 = vmatprep.subr.bf16.mxu0 %v2519_v51 }
 0x10c   : > { %2396 = vmatpush3.bf16.msra.mxu1 %v2705_v22 }
 0x10d   : > { %1505 = vmatmul.mubr.bf16.vlgmr.msra.gmra.mxu0 %v2505_v50  ;;  %v3024_v55 = vpop.f32.mrf.mxu0  ;;  %2213 = vmatprep.subr.bf16.mxu1 %v2520_v56 }
 0x10e   : > { %2402 = vmatpush3.bf16.msra.mxu0 %v2519_v51  ;;  %1512 = vmatprep.mubr.bf16.mxu0 %v2510_v52 }
 0x10f   : > { %2403 = vmatprep.subr.bf16.mxu0 %v2583_v4  ;;  %2398 = vmatmul.mubr.bf16.vlgmr.msra.gmra.mxu1 %v2509_v54  ;;  %v1954_v63 = vpop.f32.mrf.mxu0  ;;  %v1582_v4 = vpack.c.bf16 %v1579_v60, %v1578_v59 }
 0x110   : > { %2214 = vmatpush3.bf16.msra.mxu1 %v2521_v61  ;;  %1685 = vmatprep.mubr.bf16.mxu1 %v2515_v57 }
 0x111   : > { %2215 = vmatprep.subr.bf16.mxu1 %v2596_v6  ;;  %v1956_v26 = vpop.f32.mrf.mxu0  ;;  %v504_v6 = vpop.f32.mrf.mxu1 }
 0x112   : > { %2404 = vmatpush3.bf16.msra.mxu0 %v2522_v62  ;;  %v505_v39 = vadd.f32 %v1917_v33, %v504_v6 }
 0x113   : > { %2405 = vmatprep.subr.bf16.mxu0 %v2602_v7  ;;  %v2525_v7 = vld [vmem:[%s3140_s1 + $0x28] sm:$0xff]   ;;  %v1957_v27 = vpop.f32.mrf.mxu0  ;;  %v3056_v28 = vpop.f32.mrf.mxu1 }
 0x114   : > { %2216 = vmatpush3.bf16.msra.mxu1 %v2523_v24  ;;  %v1958_v36 = vadd.f32 %v1957_v27, %v1956_v26  ;;  %v516_v3 = vadd.f32 %v3056_v28, %v1926_v48 }
 0x115   : > { %1513 = vmatmul.mubr.bf16.gmra.mxu0 %v2512_v58  ;;  %2217 = vmatprep.subr.bf16.mxu1 %v2614_v9  ;;  %v1959_v9 = vpop.f32.mrf.mxu0  ;;  %v507_v29 = vpop.f32.mrf.mxu1 }
 0x116   : > { %2406 = vmatpush3.bf16.msra.mxu0 %v2524_v25  ;;  %2417 = vmatprep.mubr.bf16.mxu0 %v1582_v4  ;;  %v508_v5 = vadd.f32 %v1920_v40, %v507_v29 }
 0x117   : > { %2407 = vmatprep.subr.bf16.mxu0 %v2621_v10 }
 0x118   : > { %2218 = vmatpush3.bf16.msra.mxu1 %v2525_v7 }
 0x119   : > { %2219 = vmatprep.subr.bf16.mxu1 %v2633_v12  ;;  %v1960_v12 = vpop.f32.mrf.mxu0 }
 0x11a   : > { %2408 = vmatpush3.bf16.msra.mxu0 %v2621_v10  ;;  %v2279_v10 = vpop.f32.mrf.mxu1  ;;  %v1961_v37 = vadd.f32 %v1960_v12, %v1959_v9 }
 0x11b   : > { %2409 = vmatprep.subr.bf16.mxu0 %v2640_v13  ;;  %v1962_v30 = vpop.f32.mrf.mxu0 }
 0x11c   : > { %2220 = vmatpush3.bf16.msra.mxu1 %v2626_v11  ;;  %v1580_v11 = vld [vmem:[#allocation3 + $0x10] sm:$0xff]  ;;  %v651_v47 = vadd.f32 %v2279_v10, %v1961_v37 }
 0x11d   : > { %2221 = vmatprep.subr.bf16.mxu1 %v2656_v15  ;;  %v642_v15 = vpop.f32.mrf.mxu1 }
 0x11e   : > { %2410 = vmatpush3.bf16.msra.mxu0 %v2640_v13  ;;  %v1581_v13 = vld [vmem:[#allocation3 + $0x18] sm:$0x7]  ;;  %v659_v60 = vmax.f32 %v513_v8, %v651_v47 }
 0x11f   : > { %2411 = vmatprep.subr.bf16.mxu0 %v2663_v16 }
 0x120   : > { %2222 = vmatpush3.bf16.msra.mxu1 %v2647_v14  ;;  %v1583_v14 = vpack.c.bf16 %v1581_v13, %v1580_v11 }
 0x121   : > { %2223 = vmatprep.subr.bf16.mxu1 %v2676_v18  ;;  %v1963_v18 = vpop.f32.mrf.mxu0 }
 0x122   : > { %2412 = vmatpush3.bf16.msra.mxu0 %v2663_v16  ;;  %v2280_v16 = vpop.f32.mrf.mxu1  ;;  %v1964_v51 = vadd.f32 %v1963_v18, %v1962_v30 }
 0x123   : > { %2413 = vmatprep.subr.bf16.mxu0 %v2683_v19 }
 0x124   : > { %2224 = vmatpush3.bf16.msra.mxu1 %v2670_v17  ;;  %v1955_v17 = vadd.f32 %v1954_v63, %v3024_v55  ;;  %v645_v34 = vpop.f32.mrf.mxu1  ;;  %v654_v62 = vadd.f32 %v2280_v16, %v1964_v51 }
 0x125   : > { %2225 = vmatprep.subr.bf16.mxu1 %v2695_v21  ;;  %v2516_v21 = vld [vmem:[%s2700_s7 + $0x68] ss:$36 sps:$4 sm:$0x3f]   ;;  %v646_v44 = vadd.f32 %v1958_v36, %v645_v34 }
 0x126   : > { %2414 = vmatpush3.bf16.msra.mxu0 %v2683_v19  ;;  %v2513_v19 = vld [vmem:[%s2700_s7 + $0x1c] ss:$36 sps:$4 sm:$0xff]   ;;  %v660_v7 = vmax.f32 %v516_v3, %v654_v62 }
 0x127   : > { %2415 = vmatprep.subr.bf16.mxu0 %v2705_v22  ;;  %v658_v56 = vmax.f32 %v508_v5, %v646_v44 }
 0x128   : > { %2226 = vmatpush3.bf16.msra.mxu1 %v2690_v20  ;;  %v643_v20 = vadd.f32 %v1955_v17, %v642_v15 }
 0x129   : > { %2227 = vmatprep.subr.bf16.mxu1 %v2723_v31 }
 0x12a   : > { %2416 = vmatpush3.bf16.msra.mxu0 %v2705_v22  ;;  %v657_v43 = vmax.f32 %v505_v39, %v643_v20 }
 0x12c   : > { %2228 = vmatpush3.bf16.msra.mxu1 %v2712_v23 }
 0x12d   : > { %v1991_v32 = vpop.f32.mrf.mxu0  ;;  %2418 = vmatmul.mubr.bf16.vlgmr.msra.gmra.mxu0 %v1583_v14  ;;  %v839_v14 = vld [vmem:[%s3098_s13 + $0x24] sm:$0x3] }
 0x12f   : > { %v1992_v35 = vpop.f32.mrf.mxu0  ;;  %v2299_v38 = vpop.f32.mrf.mxu1  ;;  %1686 = vmatmul.mubr.bf16.vlgmr.msra.gmra.mxu1 %v2513_v19 }
 0x130   : > { %v1993_v22 = vadd.f32 %v1992_v35, %v1991_v32  ;;  %1693 = vmatprep.mubr.bf16.mxu1 %v2516_v21 }
 0x131   : > { %v1994_v31 = vpop.f32.mrf.mxu0  ;;  %v784_v23 = vpop.f32.mrf.mxu1 }
 0x132   : > { %v785_v45 = vadd.f32 %v1993_v22, %v784_v23 }
 0x133   : > { %v1995_v42 = vpop.f32.mrf.mxu0  ;;  %v2300_v1 = vpop.f32.mrf.mxu1 }
 0x134   : > { %v1996_v46 = vadd.f32 %v1995_v42, %v1994_v31  ;;  %v799_v52 = vmax.f32 %v657_v43, %v785_v45 }
 0x135   : > { %v1997_v50 = vpop.f32.mrf.mxu0  ;;  %v787_v54 = vpop.f32.mrf.mxu1 }
 0x136   : > { %v809_v57 = vadd.f32 %v3086_v2, %v799_v52  ;;  %v788_v58 = vadd.f32 %v1996_v46, %v787_v54 }
 0x137   : > { %v1998_v55 = vpop.f32.mrf.mxu0  ;;  %1694 = vmatmul.mubr.bf16.gmra.mxu1 %v2518_v0 }
 0x138   : > { %v1999_v59 = vadd.f32 %v1998_v55, %v1997_v50  ;;  %v813_v63 = vmax.f32 %v809_v57, 0.0  ;;  %v800_v4 = vmax.f32 %v658_v56, %v788_v58 }
 0x139   : > { %v2000_v61 = vpop.f32.mrf.mxu0 }
 0x13a   : > { %v793_v24 = vadd.f32 %v2299_v38, %v1999_v59  ;;  %v1887_v53 = vpack.c.bf16 %v813_v63, %v813_v63  ;;  %v810_v25 = vadd.f32 %v3086_v2, %v800_v4 }
 0x13b   : > { %v2001_v49 = vpop.f32.mrf.mxu0 }
 0x13c   : > { %v801_v26 = vmax.f32 %v659_v60, %v793_v24  ;;  %v2002_v6 = vadd.f32 %v2001_v49, %v2000_v61  ;;  %833 = vst [vmem:[%s3098_s13] sm:$0xf] %v1887_v53  ;;  %v814_v27 = vmax.f32 %v810_v25, 0.0 }
 0x13e   : > { %v811_v28 = vadd.f32 %v3086_v2, %v801_v26  ;;  %v796_v9 = vadd.f32 %v2300_v1, %v2002_v6  ;;  %v1888_v29 = vpack.c.bf16 %v814_v27, %v814_v27 }
 0x140   : > { %v815_v10 = vmax.f32 %v811_v28, 0.0  ;;  %v802_v12 = vmax.f32 %v660_v7, %v796_v9  ;;  %834 = vst [vmem:[%s3098_s13 + $0xc] sm:$0xf] %v1888_v29 }
 0x142   : > { %v1889_v11 = vpack.c.bf16 %v815_v10, %v815_v10  ;;  %v812_v13 = vadd.f32 %v3086_v2, %v802_v12 }
 0x144   : > { %835 = vst [vmem:[%s3098_s13 + $0x18] sm:$0xf] %v1889_v11  ;;  %v816_v15 = vmax.f32 %v812_v13, 0.0 }
 0x146   : > { %v1890_v16 = vpack.c.bf16 %v816_v15, %v816_v15 }
 0x148   : > { %v840_v18 = vsel %vm3106_vm2, %v1890_v16, %v839_v14 }
 0x149   : > { %841 = vst [vmem:[%s3098_s13 + $0x24] sm:$0x3] %v840_v18 }
 0x14d   : > { %v2029_v17 = vpop.f32.mrf.mxu0 }
 0x14f   : > { %v2030_v19 = vpop.f32.mrf.mxu0  ;;  %v2319_v37 = vpop.f32.mrf.mxu1 }
 0x150   : > { %v2031_v0 = vadd.f32 %v2030_v19, %v2029_v17 }
 0x151   : > { %v2032_v32 = vpop.f32.mrf.mxu0  ;;  %v965_v31 = vpop.f32.mrf.mxu1 }
 0x152   : > { %v966_v57 = vadd.f32 %v2031_v0, %v965_v31 }
 0x153   : > { %v2033_v33 = vpop.f32.mrf.mxu0  ;;  %v2320_v40 = vpop.f32.mrf.mxu1 }
 0x154   : > { %v2034_v58 = vadd.f32 %v2033_v33, %v2032_v32 }
 0x155   : > { %v2035_v21 = vpop.f32.mrf.mxu0  ;;  %v968_v23 = vpop.f32.mrf.mxu1 }
 0x156   : > { %v969_v25 = vadd.f32 %v2034_v58, %v968_v23 }
 0x157   : > { %v2036_v34 = vpop.f32.mrf.mxu0 }
 0x158   : > { %v2037_v59 = vadd.f32 %v2036_v34, %v2035_v21 }
 0x159   : > { %v2038_v35 = vpop.f32.mrf.mxu0 }
 0x15a   : > { %v974_v7 = vadd.f32 %v2319_v37, %v2037_v59 }
 0x15b   : > { %v2039_v20 = vpop.f32.mrf.mxu0 }
 0x15c   : > { %v2040_v27 = vadd.f32 %v2039_v20, %v2038_v35 }
 0x15e   : > { %v977_v19 = vadd.f32 %v2320_v40, %v2040_v27 }
 0x16d   : > { %v2067_v36 = vpop.f32.mrf.mxu0 }
 0x16f   : > { %v2068_v22 = vpop.f32.mrf.mxu0  ;;  %v2339_v42 = vpop.f32.mrf.mxu1 }
 0x170   : > { %v2069_v1 = vadd.f32 %v2068_v22, %v2067_v36 }
 0x171   : > { %v2070_v38 = vpop.f32.mrf.mxu0  ;;  %v1103_v44 = vpop.f32.mrf.mxu1 }
 0x172   : > { %v1104_v52 = vadd.f32 %v2069_v1, %v1103_v44 }
 0x173   : > { %v2071_v39 = vpop.f32.mrf.mxu0  ;;  %v2340_v46 = vpop.f32.mrf.mxu1 }
 0x174   : > { %v2072_v8 = vadd.f32 %v2071_v39, %v2070_v38  ;;  %v1118_v62 = vmax.f32 %v966_v57, %v1104_v52 }
 0x175   : > { %v2073_v41 = vpop.f32.mrf.mxu0  ;;  %v1106_v5 = vpop.f32.mrf.mxu1 }
 0x176   : > { %v1107_v63 = vadd.f32 %v2072_v8, %v1106_v5 }
 0x177   : > { %v2074_v43 = vpop.f32.mrf.mxu0 }
 0x178   : > { %v2075_v54 = vadd.f32 %v2074_v43, %v2073_v41  ;;  %v1119_v29 = vmax.f32 %v969_v25, %v1107_v63 }
 0x179   : > { %v2076_v45 = vpop.f32.mrf.mxu0 }
 0x17a   : > { %v1112_v3 = vadd.f32 %v2339_v42, %v2075_v54  ;;  %v1291_v42 = vld [vmem:[%s3098_s13 + $0x28] sm:$0x3] }
 0x17b   : > { %v2077_v47 = vpop.f32.mrf.mxu0 }
 0x17c   : > { %v2078_v26 = vadd.f32 %v2077_v47, %v2076_v45  ;;  %v1120_v13 = vmax.f32 %v974_v7, %v1112_v3 }
 0x17e   : > { %v1115_v14 = vadd.f32 %v2340_v46, %v2078_v26 }
 0x180   : > { %v1121_v20 = vmax.f32 %v977_v19, %v1115_v14 }
 0x18d   : > { %v2105_v50 = vpop.f32.mrf.mxu0 }
 0x18f   : > { %v2106_v51 = vpop.f32.mrf.mxu0  ;;  %v2359_v55 = vpop.f32.mrf.mxu1 }
 0x190   : > { %v2107_v48 = vadd.f32 %v2106_v51, %v2105_v50 }
 0x191   : > { %v2108_v56 = vpop.f32.mrf.mxu0  ;;  %v1245_v60 = vpop.f32.mrf.mxu1 }
 0x192   : > { %v1246_v4 = vadd.f32 %v2107_v48, %v1245_v60 }
 0x193   : > { %v2109_v61 = vpop.f32.mrf.mxu0  ;;  %v2360_v49 = vpop.f32.mrf.mxu1 }
 0x194   : > { %v2110_v24 = vadd.f32 %v2109_v61, %v2108_v56  ;;  %v1260_v6 = vmax.f32 %v1118_v62, %v1246_v4 }
 0x195   : > { %v2111_v53 = vpop.f32.mrf.mxu0  ;;  %v1248_v28 = vpop.f32.mrf.mxu1 }
 0x196   : > { %v1264_v10 = vadd.f32 %v3086_v2, %v1260_v6  ;;  %v1249_v12 = vadd.f32 %v2110_v24, %v1248_v28 }
 0x197   : > { %v2112_v9 = vpop.f32.mrf.mxu0 }
 0x198   : > { %v2113_v11 = vadd.f32 %v2112_v9, %v2111_v53  ;;  %v1268_v16 = vmax.f32 %v1264_v10, 0.0  ;;  %v1261_v18 = vmax.f32 %v1119_v29, %v1249_v12 }
 0x199   : > { %v2114_v15 = vpop.f32.mrf.mxu0 }
 0x19a   : > { %v1254_v17 = vadd.f32 %v2359_v55, %v2113_v11  ;;  %v1891_v33 = vpack.c.bf16 %v1268_v16, %v1268_v16  ;;  %v1265_v21 = vadd.f32 %v3086_v2, %v1261_v18 }
 0x19b   : > { %v2115_v32 = vpop.f32.mrf.mxu0 }
 0x19c   : > { %v1262_v34 = vmax.f32 %v1120_v13, %v1254_v17  ;;  %v2116_v35 = vadd.f32 %v2115_v32, %v2114_v15  ;;  %1288 = vst [vmem:[%s3098_s13 + $0x4] sm:$0xf] %v1891_v33  ;;  %v1269_v36 = vmax.f32 %v1265_v21, 0.0 }
 0x19e   : > { %v1266_v22 = vadd.f32 %v3086_v2, %v1262_v34  ;;  %v1257_v37 = vadd.f32 %v2360_v49, %v2116_v35  ;;  %v1892_v38 = vpack.c.bf16 %v1269_v36, %v1269_v36 }
 0x1a0   : > { %v1270_v31 = vmax.f32 %v1266_v22, 0.0  ;;  %v1263_v39 = vmax.f32 %v1121_v20, %v1257_v37  ;;  %1289 = vst [vmem:[%s3098_s13 + $0x10] sm:$0xf] %v1892_v38 }
 0x1a2   : > { %v1893_v40 = vpack.c.bf16 %v1270_v31, %v1270_v31  ;;  %v1267_v41 = vadd.f32 %v3086_v2, %v1263_v39 }
 0x1a4   : > { %1290 = vst [vmem:[%s3098_s13 + $0x1c] sm:$0xf] %v1893_v40  ;;  %v1271_v23 = vmax.f32 %v1267_v41, 0.0 }
 0x1a6   : > { %v1894_v43 = vpack.c.bf16 %v1271_v23, %v1271_v23 }
 0x1a8   : > { %v1292_v44 = vsel %vm3106_vm2, %v1894_v43, %v1291_v42 }
 0x1a9   : > { %1293 = vst [vmem:[%s3098_s13 + $0x28] sm:$0x3] %v1292_v44 }
 0x1ad   : > { %v2143_v45 = vpop.f32.mrf.mxu0 }
 0x1af   : > { %v2144_v46 = vpop.f32.mrf.mxu0  ;;  %v2379_v48 = vpop.f32.mrf.mxu1 }
 0x1b0   : > { %v2145_v26 = vadd.f32 %v2144_v46, %v2143_v45 }
 0x1b1   : > { %v2146_v47 = vpop.f32.mrf.mxu0  ;;  %v1417_v55 = vpop.f32.mrf.mxu1 }
 0x1b2   : > { %v1418_v29 = vadd.f32 %v2145_v26, %v1417_v55 }
 0x1b3   : > { %v2147_v1 = vpop.f32.mrf.mxu0  ;;  %v2380_v57 = vpop.f32.mrf.mxu1 }
 0x1b4   : > { %v2148_v10 = vadd.f32 %v2147_v1, %v2146_v47 }
 0x1b5   : > { %v2149_v50 = vpop.f32.mrf.mxu0  ;;  %v1420_v59 = vpop.f32.mrf.mxu1 }
 0x1b6   : > { %v1421_v32 = vadd.f32 %v2148_v10, %v1420_v59 }
 0x1b7   : > { %v2150_v0 = vpop.f32.mrf.mxu0 }
 0x1b8   : > { %v2151_v18 = vadd.f32 %v2150_v0, %v2149_v50 }
 0x1b9   : > { %v2152_v5 = vpop.f32.mrf.mxu0 }
 0x1ba   : > { %v1426_v38 = vadd.f32 %v2379_v48, %v2151_v18 }
 0x1bb   : > { %v2153_v51 = vpop.f32.mrf.mxu0 }
 0x1bc   : > { %v2154_v39 = vadd.f32 %v2153_v51, %v2152_v5 }
 0x1be   : > { %v1429_v50 = vadd.f32 %v2380_v57, %v2154_v39  ;;  %v1733_v57 = vld [vmem:[%s3098_s13 + $0x2c] sm:$0x3] }
 0x1cd   : > { %v2181_v52 = vpop.f32.mrf.mxu0 }
 0x1cf   : > { %v2182_v8 = vpop.f32.mrf.mxu0  ;;  %v2399_v60 = vpop.f32.mrf.mxu1 }
 0x1d0   : > { %v2183_v49 = vadd.f32 %v2182_v8, %v2181_v52 }
 0x1d1   : > { %v2184_v54 = vpop.f32.mrf.mxu0  ;;  %v1555_v62 = vpop.f32.mrf.mxu1 }
 0x1d2   : > { %v1556_v7 = vadd.f32 %v2183_v49, %v1555_v62 }
 0x1d3   : > { %v2185_v56 = vpop.f32.mrf.mxu0  ;;  %v2400_v4 = vpop.f32.mrf.mxu1 }
 0x1d4   : > { %v2186_v27 = vadd.f32 %v2185_v56, %v2184_v54  ;;  %v1570_v15 = vmax.f32 %v1418_v29, %v1556_v7 }
 0x1d5   : > { %v2187_v58 = vpop.f32.mrf.mxu0  ;;  %v1558_v53 = vpop.f32.mrf.mxu1 }
 0x1d6   : > { %v1559_v14 = vadd.f32 %v2186_v27, %v1558_v53 }
 0x1d7   : > { %v2188_v61 = vpop.f32.mrf.mxu0 }
 0x1d8   : > { %v2189_v11 = vadd.f32 %v2188_v61, %v2187_v58  ;;  %v1571_v20 = vmax.f32 %v1421_v32, %v1559_v14 }
 0x1d9   : > { %v2190_v63 = vpop.f32.mrf.mxu0 }
 0x1da   : > { %v1564_v34 = vadd.f32 %v2399_v60, %v2189_v11 }
 0x1db   : > { %v2191_v24 = vpop.f32.mrf.mxu0 }
 0x1dc   : > { %v2192_v36 = vadd.f32 %v2191_v24, %v2190_v63  ;;  %v1572_v42 = vmax.f32 %v1426_v38, %v1564_v34 }
 0x1de   : > { %v1567_v44 = vadd.f32 %v2400_v4, %v2192_v36 }
 0x1e0   : > { %v1573_v51 = vmax.f32 %v1429_v50, %v1567_v44 }
 0x1ed   : > { %v2419_v3 = vpop.f32.mrf.mxu0 }
 0x1ef   : > { %v1618_v25 = vpop.f32.mrf.mxu0  ;;  %v2229_v6 = vpop.f32.mrf.mxu1 }
 0x1f1   : > { %v2230_v28 = vpop.f32.mrf.mxu1  ;;  %v2420_v9 = vpop.f32.mrf.mxu0 }
 0x1f2   : > { %v2231_v12 = vadd.f32 %v2230_v28, %v2229_v6 }
 0x1f3   : > { %v2232_v13 = vpop.f32.mrf.mxu1  ;;  %v1621_v19 = vpop.f32.mrf.mxu0 }
 0x1f4   : > { %v1688_v16 = vadd.f32 %v2231_v12, %v1618_v25 }
 0x1f5   : > { %v2233_v17 = vpop.f32.mrf.mxu1 }
 0x1f6   : > { %v1702_v33 = vmax.f32 %v1570_v15, %v1688_v16  ;;  %v2234_v21 = vadd.f32 %v2233_v17, %v2232_v13 }
 0x1f7   : > { %v2235_v35 = vpop.f32.mrf.mxu1 }
 0x1f8   : > { %v1706_v22 = vadd.f32 %v3086_v2, %v1702_v33  ;;  %v1691_v37 = vadd.f32 %v2234_v21, %v1621_v19 }
 0x1f9   : > { %v2236_v31 = vpop.f32.mrf.mxu1 }
 0x1fa   : > { %v1710_v40 = vmax.f32 %v1706_v22, 0.0  ;;  %v1703_v41 = vmax.f32 %v1571_v20, %v1691_v37  ;;  %v2237_v23 = vadd.f32 %v2236_v31, %v2235_v35 }
 0x1fb   : > { %v2238_v43 = vpop.f32.mrf.mxu1 }
 0x1fc   : > { %v1895_v45 = vpack.c.bf16 %v1710_v40, %v1710_v40  ;;  %v1707_v46 = vadd.f32 %v3086_v2, %v1703_v41  ;;  %v1696_v47 = vadd.f32 %v2419_v3, %v2237_v23 }
 0x1fd   : > { %v2239_v1 = vpop.f32.mrf.mxu1 }
 0x1fe   : > { %1730 = vst [vmem:[%s3098_s13 + $0x8] sm:$0xf] %v1895_v45  ;;  %v1711_v0 = vmax.f32 %v1707_v46, 0.0  ;;  %v1704_v52 = vmax.f32 %v1572_v42, %v1696_v47  ;;  %v2240_v5 = vadd.f32 %v2239_v1, %v2238_v43 }
 0x200   : > { %v1896_v8 = vpack.c.bf16 %v1711_v0, %v1711_v0  ;;  %v1708_v48 = vadd.f32 %v3086_v2, %v1704_v52  ;;  %v1699_v54 = vadd.f32 %v2420_v9, %v2240_v5 }
 0x202   : > { %1731 = vst [vmem:[%s3098_s13 + $0x14] sm:$0xf] %v1896_v8  ;;  %v1712_v55 = vmax.f32 %v1708_v48, 0.0  ;;  %v1705_v56 = vmax.f32 %v1573_v51, %v1699_v54 }
 0x204   : > { %v1897_v58 = vpack.c.bf16 %v1712_v55, %v1712_v55  ;;  %v1709_v59 = vadd.f32 %v3086_v2, %v1705_v56 }
 0x206   : > { %1732 = vst [vmem:[%s3098_s13 + $0x20] sm:$0xf] %v1897_v58  ;;  %v1713_v60 = vmax.f32 %v1709_v59, 0.0 }
 0x208   : > { %v1898_v61 = vpack.c.bf16 %v1713_v60, %v1713_v60 }
 0x20a   : > { %v1734_v62 = vsel %vm3106_vm2, %v1898_v61, %v1733_v57 }
 0x20b   : > { %1735 = vst [vmem:[%s3098_s13 + $0x2c] sm:$0x3] %v1734_v62 }
 0x20c PF: > { %s13_s12 = sadd.s32 1, %s2532_s12  }
 0x20d   : > { %p10_p4 = scmp.ge.s32.totalorder %s13_s12, 4  }
 0x20f   :  { %12 = sbr.rel (!%p10_p4) target bundleno = 1 (0x1), region = 62 }

</bundles_post_ra>
